<compile_context>
chip_gen: v7x
topology: tpu7x:2x2x1
jax: 0.10.0
libtpu: 0.0.40
codegen_flags: <defaults>
</compile_context>

<pallas_src>
import math
import functools

import jax
import jax.numpy as jnp
from jax.experimental import pallas as pl
from jax.experimental.pallas import tpu as pltpu


# ----------------------------------------------------------------------------
# Small-matmul helper: VPU broadcast-MAC at tiny contraction dims, MXU otherwise
# ----------------------------------------------------------------------------

def _small_matmul(w, x):
    """w @ x with w: (O, Cc) small weights (f32), x: (Cc, T) activation tile.

    For tiny contraction dims the padded MXU would run at <2% utilization, so
    the contraction is unrolled as VPU broadcast multiply-accumulates.  For
    larger channel counts this falls back to an MXU dot.
    """
    _, c_dim = w.shape
    if c_dim <= 16:
        acc = w[:, 0:1] * x[0:1, :]
        for c in range(1, c_dim):
            acc = acc + w[:, c:c + 1] * x[c:c + 1, :]
        return acc
    return jnp.dot(w, x, preferred_element_type=jnp.float32)


# ----------------------------------------------------------------------------
# Fused Pallas kernel: input conv -> residual layers -> skip sum -> output head
# ----------------------------------------------------------------------------

def timba_fused_kernel(xin_ref, cond_ref, dproj_ref, lw_ref, hw_ref,
                       o_ref, h_ref, skip_ref, *, channels, num_layers):
    C = channels
    inv_sqrt2 = 1.0 / math.sqrt(2.0)

    # unpack the packed head-weight slab (fetched once; constant index_map)
    hw = hw_ref[...]                       # (C, C + 6)
    in_w = hw[:, 0:2]                      # input_projection weight   (C, 2)
    in_b = hw[:, 2:3]                      # input_projection bias     (C, 1)
    out1_w = hw[:, 3:3 + C]                # output_projection1 weight (C, C)
    out1_b = hw[:, 3 + C:4 + C]            # output_projection1 bias   (C, 1)
    out2_w = hw[:, 4 + C:5 + C]            # output_projection2 weight (C, 1) (transposed)
    out2_b = hw[0:1, 5 + C:6 + C]          # output_projection2 bias   (1, 1)

    # input_projection (Conv1d 1x1, 2 -> C) + ReLU on this lane tile
    x = xin_ref[0].astype(jnp.float32)                              # (2, T)
    h_ref[...] = jnp.maximum(_small_matmul(in_w, x) + in_b, 0.0)    # (C, T)
    skip_ref[...] = jnp.zeros_like(skip_ref)

    for l in range(num_layers):
        wl = lw_ref[l]                                              # (4C, C+1)
        mid_w = wl[:2 * C, :C]
        outp_w = wl[2 * C:, :C]
        outp_b = wl[2 * C:, C:C + 1]

        h = h_ref[...]
        # diffusion_projection add: per-batch (C, 1) column broadcast over lanes
        y = h + dproj_ref[0, l]
        # TODO(synk): CustomMamba.forward_time / SpatialLearning.forward_feature
        #             sources not provided; applied as identity.
        # mid_projection; cond_ref already holds cond_projection(side)+cond_b+mid_b
        y2 = _small_matmul(mid_w, y) + cond_ref[l].astype(jnp.float32)
        z = jax.nn.sigmoid(y2[:C, :]) * jnp.tanh(y2[C:, :])
        out = _small_matmul(outp_w, z) + outp_b
        h_ref[...] = (h + out[:C, :]) * inv_sqrt2                   # residual
        skip_ref[...] = skip_ref[...] + out[C:, :]                  # skip accumulation

    s = skip_ref[...] * (1.0 / math.sqrt(num_layers))

    # output_projection1 (C -> C) + ReLU
    hh = jnp.maximum(_small_matmul(out1_w, s) + out1_b, 0.0)
    # output_projection2 (C -> 1): weighted sublane reduction, not a 1-row matmul
    o_ref[0] = jnp.sum(out2_w * hh, axis=0, keepdims=True) + out2_b


def _pick_tile_n(n, cap=512):
    """Largest lane tile that is a multiple of 128, divides n, and is <= cap.
    Falls back to the full extent when n is not 128-aligned (still legal)."""
    if n % 128 != 0:
        return n
    t = max(128, (min(cap, n) // 128) * 128)
    while n % t != 0:
        t -= 128
    return t


def timba_fused(xin, cond, dproj, lw, hw, *, channels, num_layers, tile_n=None):
    B, _, N = xin.shape
    C, Lyr = channels, num_layers
    T = _pick_tile_n(N) if tile_n is None else tile_n
    assert N % T == 0
    n_tiles = N // T

    kern = functools.partial(timba_fused_kernel, channels=C, num_layers=Lyr)

    # advisory cost estimate so XLA schedules the surrounding glue around the call
    M = B * N
    flops = M * (Lyr * (2 * (2 * C) * C * 2 + 10 * C) + 2 * 2 * C + 2 * C * C + 2 * C)
    transcendentals = M * Lyr * 2 * C
    bytes_accessed = (xin.size * xin.dtype.itemsize
                      + cond.size * cond.dtype.itemsize
                      + dproj.size * 4 + lw.size * 4 + hw.size * 4 + M * 4)

    return pl.pallas_call(
        kern,
        out_shape=jax.ShapeDtypeStruct((B, 1, N), jnp.float32),
        # batch innermost: the cond block index ignores it, so the cond tile
        # stays VMEM-resident across batch iterations (no re-DMA).
        grid=(n_tiles, B),
        in_specs=[
            pl.BlockSpec((1, 2, T), lambda j, b: (b, 0, j)),            # xin (bf16)
            pl.BlockSpec((Lyr, 2 * C, T), lambda j, b: (0, 0, j)),      # cond (bf16, batch-invariant)
            pl.BlockSpec((1, Lyr, C, 1), lambda j, b: (b, 0, 0, 0)),    # dproj (compact per-batch)
            pl.BlockSpec((Lyr, 4 * C, C + 1), lambda j, b: (0, 0, 0)),  # packed layer weights
            pl.BlockSpec((C, C + 6), lambda j, b: (0, 0)),              # packed head weights
        ],
        out_specs=pl.BlockSpec((1, 1, T), lambda j, b: (b, 0, j)),      # lane-dense stores
        scratch_shapes=[pltpu.VMEM((C, T), jnp.float32),    # h (residual state)
                        pltpu.VMEM((C, T), jnp.float32)],   # skip accumulator
        compiler_params=pltpu.CompilerParams(
            dimension_semantics=("parallel", "parallel"),
            vmem_limit_bytes=48 * 1024 * 1024),
        cost_estimate=pl.CostEstimate(flops=int(flops),
                                      transcendentals=int(transcendentals),
                                      bytes_accessed=int(bytes_accessed)),
    )(xin, cond, dproj, lw, hw)


# ----------------------------------------------------------------------------
# Plain-JAX glue (embeddings, side info, weight packing, parameter init)
# ----------------------------------------------------------------------------

def make_side_flat(K, L, embed_table):
    """SideInfo.forward (batch-invariant): 128-d time PE + 16-d node embedding,
    returned channel-major as (144, K*L) with n = k*L + l."""
    pos = jnp.arange(L, dtype=jnp.float32)
    div_term = 1.0 / (10000.0 ** (jnp.arange(0, 128, 2, dtype=jnp.float32) / 128.0))
    arg = pos[:, None] * div_term[None, :]                            # (L, 64)
    pe = jnp.stack([jnp.sin(arg), jnp.cos(arg)], axis=-1).reshape(L, 128)
    time_embed = jnp.broadcast_to(pe[:, None, :], (L, K, 128))
    feat_embed = jnp.broadcast_to(embed_table[None, :, :], (L, K, 16))
    side = jnp.concatenate([time_embed, feat_embed], axis=-1)         # (L, K, 144)
    side = jnp.transpose(side, (2, 1, 0))                             # (144, K, L)
    return side.reshape(144, K * L)


def build_diffusion_table(num_steps, dim):
    # TODO(synk): DiffusionEmbedding source not provided; standard CSDI form assumed.
    half = dim // 2
    steps = jnp.arange(num_steps, dtype=jnp.float32)[:, None]
    freqs = 10.0 ** (jnp.arange(half, dtype=jnp.float32) / (half - 1) * 4.0)[None, :]
    table = steps * freqs
    return jnp.concatenate([jnp.sin(table), jnp.cos(table)], axis=1)  # (num_steps, dim)


def diffusion_embedding(table, step, w1, b1, w2, b2):
    x = table[step]                         # (B, D)
    x = jax.nn.silu(x @ w1.T + b1)
    x = jax.nn.silu(x @ w2.T + b2)
    return x


def _pack_layer_weights(p, C, Lyr):
    """(Lyr, 4C, C+1) slab: rows [0:2C] = mid_w, rows [2C:4C] = [outp_w | outp_b]."""
    top = jnp.concatenate([p['mid_w'], jnp.zeros((Lyr, 2 * C, 1), jnp.float32)], axis=2)
    bot = jnp.concatenate([p['outp_w'], p['outp_b']], axis=2)
    return jnp.concatenate([top, bot], axis=1)


def _pack_head_weights(p, C):
    """(C, C+6) slab: [input_w | input_b | out1_w | out1_b | out2_w^T | out2_b@row0]."""
    out2_b_col = jnp.zeros((C, 1), jnp.float32).at[0, 0].set(p['out2_b'][0, 0])
    return jnp.concatenate([p['input_w'], p['input_b'],
                            p['out1_w'], p['out1_b'],
                            p['out2_w'].T, out2_b_col], axis=1)


def init_timba_params(key, cfg):
    C = cfg['channels']
    D = cfg['diffusion_embedding_dim']
    S = cfg['side_dim']
    K = cfg['num_nodes']
    Lyr = cfg['layers']
    keys = iter(jax.random.split(key, 32))

    def w(shape, scale=0.1):
        return (jax.random.normal(next(keys), shape) * scale).astype(jnp.float32)

    p = {
        'embed_table': w((K, 16), 1.0),
        'diff_table': build_diffusion_table(cfg['num_steps'], D),
        'demb_w1': w((D, D)), 'demb_b1': w((D,), 0.01),
        'demb_w2': w((D, D)), 'demb_b2': w((D,), 0.01),
        'input_w': w((C, 2)), 'input_b': w((C, 1), 0.01),
        'out1_w': w((C, C)), 'out1_b': w((C, 1), 0.01),
        'out2_w': jnp.zeros((1, C), jnp.float32),   # nn.init.zeros_ in __init__
        'out2_b': w((1, 1), 0.01),
        # residual-layer parameters stacked along a leading layer axis
        'dp_w': w((Lyr, C, D)), 'dp_b': w((Lyr, C), 0.01),
        'mid_w': w((Lyr, 2 * C, C)), 'mid_b': w((Lyr, 2 * C), 0.01),
        'cond_w': w((Lyr, 2 * C, S)), 'cond_b': w((Lyr, 2 * C), 0.01),
        'outp_w': w((Lyr, 2 * C, C)), 'outp_b': w((Lyr, 2 * C, 1), 0.01),
    }
    return p


# ----------------------------------------------------------------------------
# TIMBA forward
# ----------------------------------------------------------------------------

def timba_preprocess(params, x, itp_x, diffusion_step, cfg):
    B, L, K, _ = x.shape
    C = cfg['channels']
    Lyr = cfg['layers']
    N = K * L

    # cat along last dim, permute to (B, 2, K, L), flatten spatial -> (B, 2, K*L)
    xcat = jnp.concatenate([x, itp_x], axis=-1)              # (B, L, K, 2)
    xcat = jnp.transpose(xcat, (0, 3, 2, 1))                 # (B, 2, K, L)
    xin = xcat.reshape(B, 2, N).astype(jnp.bfloat16)

    # batch-invariant side info + per-layer conditioning (cond_b, mid_b folded in)
    side = make_side_flat(K, L, params['embed_table'])                       # (S, N)
    cond = jnp.einsum('lcs,sn->lcn', params['cond_w'], side)                 # (Lyr, 2C, N)
    cond = cond + params['cond_b'][:, :, None] + params['mid_b'][:, :, None]
    cond = cond.astype(jnp.bfloat16)

    # TODO(synk): itp branch (itp_projection / cond_projection /
    #   GuidanceConstructTimba) only feeds the CustomMamba / SpatialLearning
    #   blocks, whose sources are not provided and are treated as identity,
    #   so it is omitted here (dead compute).

    demb = diffusion_embedding(params['diff_table'], diffusion_step,
                               params['demb_w1'], params['demb_b1'],
                               params['demb_w2'], params['demb_b2'])          # (B, D)
    dproj = (jnp.einsum('lcd,bd->blc', params['dp_w'], demb)
             + params['dp_b'][None, :, :])                                    # (B, Lyr, C)
    dproj = dproj[..., None].astype(jnp.float32)                              # (B, Lyr, C, 1)

    lw = _pack_layer_weights(params, C, Lyr)
    hw = _pack_head_weights(params, C)
    return xin, cond, dproj, lw, hw


def timba_forward(params, x, itp_x, u, diffusion_step, cfg):
    del u  # unused by the reference forward
    B, L, K, _ = x.shape
    C = cfg['channels']
    Lyr = cfg['layers']
    N = K * L

    xin, cond, dproj, lw, hw = timba_preprocess(params, x, itp_x, diffusion_step, cfg)
    out = timba_fused(xin, cond, dproj, lw, hw, channels=C, num_layers=Lyr)   # (B, 1, N)
    out = out.reshape(B, K, L)
    return jnp.transpose(out, (0, 2, 1))[..., None]                            # (B, L, K, 1)


# ----------------------------------------------------------------------------
# Pure-JAX reference (same preprocessed inputs) for the smoke-test check
# ----------------------------------------------------------------------------

def timba_dense_ref(xin, cond, dproj, params, *, channels, num_layers):
    C, Lyr = channels, num_layers
    hi = jax.lax.Precision.HIGHEST
    x = xin.astype(jnp.float32)                                        # (B, 2, N)
    cond32 = cond.astype(jnp.float32)
    h = jnp.maximum(jnp.einsum('ci,bin->bcn', params['input_w'], x, precision=hi)
                    + params['input_b'][None], 0.0)                    # (B, C, N)
    skip = jnp.zeros_like(h)
    for l in range(Lyr):
        y = h + dproj[:, l]                                            # (B, C, 1) broadcast
        y2 = (jnp.einsum('oc,bcn->bon', params['mid_w'][l], y, precision=hi)
              + cond32[l][None])
        z = jax.nn.sigmoid(y2[:, :C]) * jnp.tanh(y2[:, C:])
        out = (jnp.einsum('oc,bcn->bon', params['outp_w'][l], z, precision=hi)
               + params['outp_b'][l][None])
        h = (h + out[:, :C]) / math.sqrt(2.0)
        skip = skip + out[:, C:]
    s = skip / math.sqrt(Lyr)
    hh = jnp.maximum(jnp.einsum('oc,bcn->bon', params['out1_w'], s, precision=hi)
                     + params['out1_b'][None], 0.0)
    return (jnp.einsum('oc,bcn->bon', params['out2_w'], hh, precision=hi)
            + params['out2_b'][None])                                  # (B, 1, N)


# ----------------------------------------------------------------------------
# Main
# ----------------------------------------------------------------------------

if __name__ == "__main__":
    cfg = dict(
        num_nodes=8,
        time_steps=128,
        channels=8,
        diffusion_embedding_dim=32,
        layers=2,
        num_steps=50,
        side_dim=144,   # 128 time PE + 16 node embedding
    )
    key = jax.random.PRNGKey(0)
    pkey, xkey, ikey, dkey, okey = jax.random.split(key, 5)

    params = init_timba_params(pkey, cfg)
    # The module zero-inits output_projection2.weight; perturb it here so the
    # smoke test actually exercises the residual-layer math path.
    params['out2_w'] = 0.1 * jax.random.normal(okey, (1, cfg['channels']), dtype=jnp.float32)

    B, K, L = 2, cfg['num_nodes'], cfg['time_steps']
    x = jax.random.normal(xkey, (B, L, K, 1), dtype=jnp.float32)
    itp_x = jax.random.normal(ikey, (B, L, K, 1), dtype=jnp.float32)
    u = None
    diffusion_step = jax.random.randint(dkey, (B,), 0, cfg['num_steps'])

    fwd = jax.jit(functools.partial(timba_forward, cfg=cfg))
    out = jax.block_until_ready(fwd(params, x, itp_x, u, diffusion_step))
    assert out.shape == (B, L, K, 1), out.shape
    assert bool(jnp.all(jnp.isfinite(out)))

    # correctness check: Pallas kernel vs pure-JAX reference on the same inputs
    xin, cond, dproj, lw, hw = timba_preprocess(params, x, itp_x, diffusion_step, cfg)
    got = timba_fused(xin, cond, dproj, lw, hw,
                      channels=cfg['channels'], num_layers=cfg['layers'])
    want = timba_dense_ref(xin, cond, dproj, params,
                           channels=cfg['channels'], num_layers=cfg['layers'])
    err = float(jnp.max(jnp.abs(got - want)))
    assert err < 5e-3, f"kernel/reference mismatch: max abs err = {err}"

    print("KERNEL_OK")
</pallas_src>

<mosaic_0001>
module attributes {stable_mosaic.version = 11 : i64} {
  func.func @timba_fused_kernel(%arg0: i32, %arg1: i32, %arg2: memref<1x2x512xbf16, #tpu.memory_space<vmem>>, %arg3: memref<2x16x512xbf16, #tpu.memory_space<vmem>>, %arg4: memref<1x2x8x1xf32, #tpu.memory_space<vmem>>, %arg5: memref<2x32x9xf32, #tpu.memory_space<vmem>>, %arg6: memref<8x14xf32, #tpu.memory_space<vmem>>, %arg7: memref<1x1x512xf32, #tpu.memory_space<vmem>>, %arg8: memref<8x512xf32, #tpu.memory_space<vmem>>, %arg9: memref<8x512xf32, #tpu.memory_space<vmem>>) attributes {dimension_semantics = [#tpu.dimension_semantics<parallel>, #tpu.dimension_semantics<parallel>], iteration_bounds = array<i64: 2, 2>, scalar_prefetch = 0 : i64, scratch_operands = 2 : i64, tpu.core_type = #tpu.core_type<tc>, window_params = [{transform_indices = @transform_0, window_bounds = array<i64: 1, 2, 512>}, {transform_indices = @transform_1, window_bounds = array<i64: 2, 16, 512>}, {transform_indices = @transform_2, window_bounds = array<i64: 1, 2, 8, 1>}, {pipeline_mode = #tpu.pipeline_mode<synchronous>, transform_indices = @transform_3, window_bounds = array<i64: 2, 32, 9>}, {pipeline_mode = #tpu.pipeline_mode<synchronous>, transform_indices = @transform_4, window_bounds = array<i64: 8, 14>}, {transform_indices = @transform_5, window_bounds = array<i64: 1, 1, 512>}]} {
    %c0 = arith.constant 0 : index
    %c0_0 = arith.constant 0 : index
    %0 = vector.load %arg6[%c0, %c0_0] : memref<8x14xf32, #tpu.memory_space<vmem>>, vector<8x14xf32>
    %1 = vector.extract_strided_slice %0 {offsets = [0, 0], sizes = [8, 2], strides = [1, 1]} : vector<8x14xf32> to vector<8x2xf32>
    %2 = vector.extract_strided_slice %0 {offsets = [0, 2], sizes = [8, 1], strides = [1, 1]} : vector<8x14xf32> to vector<8x1xf32>
    %3 = vector.extract_strided_slice %0 {offsets = [0, 3], sizes = [8, 8], strides = [1, 1]} : vector<8x14xf32> to vector<8x8xf32>
    %4 = vector.extract_strided_slice %0 {offsets = [0, 11], sizes = [8, 1], strides = [1, 1]} : vector<8x14xf32> to vector<8x1xf32>
    %5 = vector.extract_strided_slice %0 {offsets = [0, 12], sizes = [8, 1], strides = [1, 1]} : vector<8x14xf32> to vector<8x1xf32>
    %6 = vector.extract_strided_slice %0 {offsets = [0, 13], sizes = [1, 1], strides = [1, 1]} : vector<8x14xf32> to vector<1x1xf32>
    %c0_1 = arith.constant 0 : index
    %c0_2 = arith.constant 0 : index
    %c0_3 = arith.constant 0 : index
    %7 = vector.load %arg2[%c0_1, %c0_2, %c0_3] : memref<1x2x512xbf16, #tpu.memory_space<vmem>>, vector<1x2x512xbf16>
    %8 = vector.shape_cast %7 : vector<1x2x512xbf16> to vector<2x512xbf16>
    %9 = arith.extf %8 : vector<2x512xbf16> to vector<2x512xf32>
    %10 = vector.extract_strided_slice %1 {offsets = [0, 0], sizes = [8, 1], strides = [1, 1]} : vector<8x2xf32> to vector<8x1xf32>
    %11 = vector.extract_strided_slice %9 {offsets = [0, 0], sizes = [1, 512], strides = [1, 1]} : vector<2x512xf32> to vector<1x512xf32>
    %12 = vector.broadcast %10 : vector<8x1xf32> to vector<8x512xf32>
    %13 = vector.broadcast %11 : vector<1x512xf32> to vector<8x512xf32>
    %14 = arith.mulf %12, %13 : vector<8x512xf32>
    %15 = vector.extract_strided_slice %1 {offsets = [0, 1], sizes = [8, 1], strides = [1, 1]} : vector<8x2xf32> to vector<8x1xf32>
    %16 = vector.extract_strided_slice %9 {offsets = [1, 0], sizes = [1, 512], strides = [1, 1]} : vector<2x512xf32> to vector<1x512xf32>
    %17 = vector.broadcast %15 : vector<8x1xf32> to vector<8x512xf32>
    %18 = vector.broadcast %16 : vector<1x512xf32> to vector<8x512xf32>
    %19 = arith.mulf %17, %18 : vector<8x512xf32>
    %20 = arith.addf %14, %19 : vector<8x512xf32>
    %21 = vector.broadcast %2 : vector<8x1xf32> to vector<8x512xf32>
    %22 = arith.addf %20, %21 : vector<8x512xf32>
    %cst = arith.constant 0.000000e+00 : f32
    %23 = vector.broadcast %cst : f32 to vector<8x512xf32>
    %24 = arith.maximumf %22, %23 : vector<8x512xf32>
    %c0_4 = arith.constant 0 : index
    %c0_5 = arith.constant 0 : index
    %25 = vector.load %arg8[%c0_4, %c0_5] : memref<8x512xf32, #tpu.memory_space<vmem>>, vector<8x512xf32>
    tpu.vector_store %arg8[%c0_4, %c0_5], %24 {strides = array<i32>} : memref<8x512xf32, #tpu.memory_space<vmem>>, vector<8x512xf32>,
    %cst_6 = arith.constant 0.000000e+00 : f32
    %26 = vector.broadcast %cst_6 : f32 to vector<8x512xf32>
    %c0_7 = arith.constant 0 : index
    %c0_8 = arith.constant 0 : index
    %27 = vector.load %arg9[%c0_7, %c0_8] : memref<8x512xf32, #tpu.memory_space<vmem>>, vector<8x512xf32>
    tpu.vector_store %arg9[%c0_7, %c0_8], %26 {strides = array<i32>} : memref<8x512xf32, #tpu.memory_space<vmem>>, vector<8x512xf32>,
    %c0_9 = arith.constant 0 : index
    %c0_10 = arith.constant 0 : index
    %c0_11 = arith.constant 0 : index
    %28 = vector.load %arg5[%c0_9, %c0_10, %c0_11] : memref<2x32x9xf32, #tpu.memory_space<vmem>>, vector<1x32x9xf32>
    %29 = vector.shape_cast %28 : vector<1x32x9xf32> to vector<32x9xf32>
    %30 = vector.extract_strided_slice %29 {offsets = [0, 0], sizes = [16, 8], strides = [1, 1]} : vector<32x9xf32> to vector<16x8xf32>
    %31 = vector.extract_strided_slice %29 {offsets = [16, 0], sizes = [16, 8], strides = [1, 1]} : vector<32x9xf32> to vector<16x8xf32>
    %32 = vector.extract_strided_slice %29 {offsets = [16, 8], sizes = [16, 1], strides = [1, 1]} : vector<32x9xf32> to vector<16x1xf32>
    %c0_12 = arith.constant 0 : index
    %c0_13 = arith.constant 0 : index
    %33 = vector.load %arg8[%c0_12, %c0_13] : memref<8x512xf32, #tpu.memory_space<vmem>>, vector<8x512xf32>
    %c0_14 = arith.constant 0 : index
    %c0_15 = arith.constant 0 : index
    %c0_16 = arith.constant 0 : index
    %c0_17 = arith.constant 0 : index
    %34 = vector.load %arg4[%c0_14, %c0_15, %c0_16, %c0_17] : memref<1x2x8x1xf32, #tpu.memory_space<vmem>>, vector<1x1x8x1xf32>
    %35 = vector.shape_cast %34 : vector<1x1x8x1xf32> to vector<8x1xf32>
    %36 = vector.broadcast %35 : vector<8x1xf32> to vector<8x512xf32>
    %37 = arith.addf %33, %36 : vector<8x512xf32>
    %38 = vector.extract_strided_slice %30 {offsets = [0, 0], sizes = [16, 1], strides = [1, 1]} : vector<16x8xf32> to vector<16x1xf32>
    %39 = vector.extract_strided_slice %37 {offsets = [0, 0], sizes = [1, 512], strides = [1, 1]} : vector<8x512xf32> to vector<1x512xf32>
    %40 = vector.broadcast %38 : vector<16x1xf32> to vector<16x512xf32>
    %41 = vector.broadcast %39 : vector<1x512xf32> to vector<16x512xf32>
    %42 = arith.mulf %40, %41 : vector<16x512xf32>
    %43 = vector.extract_strided_slice %30 {offsets = [0, 1], sizes = [16, 1], strides = [1, 1]} : vector<16x8xf32> to vector<16x1xf32>
    %44 = vector.extract_strided_slice %37 {offsets = [1, 0], sizes = [1, 512], strides = [1, 1]} : vector<8x512xf32> to vector<1x512xf32>
    %45 = vector.broadcast %43 : vector<16x1xf32> to vector<16x512xf32>
    %46 = vector.broadcast %44 : vector<1x512xf32> to vector<16x512xf32>
    %47 = arith.mulf %45, %46 : vector<16x512xf32>
    %48 = arith.addf %42, %47 : vector<16x512xf32>
    %49 = vector.extract_strided_slice %30 {offsets = [0, 2], sizes = [16, 1], strides = [1, 1]} : vector<16x8xf32> to vector<16x1xf32>
    %50 = vector.extract_strided_slice %37 {offsets = [2, 0], sizes = [1, 512], strides = [1, 1]} : vector<8x512xf32> to vector<1x512xf32>
    %51 = vector.broadcast %49 : vector<16x1xf32> to vector<16x512xf32>
    %52 = vector.broadcast %50 : vector<1x512xf32> to vector<16x512xf32>
    %53 = arith.mulf %51, %52 : vector<16x512xf32>
    %54 = arith.addf %48, %53 : vector<16x512xf32>
    %55 = vector.extract_strided_slice %30 {offsets = [0, 3], sizes = [16, 1], strides = [1, 1]} : vector<16x8xf32> to vector<16x1xf32>
    %56 = vector.extract_strided_slice %37 {offsets = [3, 0], sizes = [1, 512], strides = [1, 1]} : vector<8x512xf32> to vector<1x512xf32>
    %57 = vector.broadcast %55 : vector<16x1xf32> to vector<16x512xf32>
    %58 = vector.broadcast %56 : vector<1x512xf32> to vector<16x512xf32>
    %59 = arith.mulf %57, %58 : vector<16x512xf32>
    %60 = arith.addf %54, %59 : vector<16x512xf32>
    %61 = vector.extract_strided_slice %30 {offsets = [0, 4], sizes = [16, 1], strides = [1, 1]} : vector<16x8xf32> to vector<16x1xf32>
    %62 = vector.extract_strided_slice %37 {offsets = [4, 0], sizes = [1, 512], strides = [1, 1]} : vector<8x512xf32> to vector<1x512xf32>
    %63 = vector.broadcast %61 : vector<16x1xf32> to vector<16x512xf32>
    %64 = vector.broadcast %62 : vector<1x512xf32> to vector<16x512xf32>
    %65 = arith.mulf %63, %64 : vector<16x512xf32>
    %66 = arith.addf %60, %65 : vector<16x512xf32>
    %67 = vector.extract_strided_slice %30 {offsets = [0, 5], sizes = [16, 1], strides = [1, 1]} : vector<16x8xf32> to vector<16x1xf32>
    %68 = vector.extract_strided_slice %37 {offsets = [5, 0], sizes = [1, 512], strides = [1, 1]} : vector<8x512xf32> to vector<1x512xf32>
    %69 = vector.broadcast %67 : vector<16x1xf32> to vector<16x512xf32>
    %70 = vector.broadcast %68 : vector<1x512xf32> to vector<16x512xf32>
    %71 = arith.mulf %69, %70 : vector<16x512xf32>
    %72 = arith.addf %66, %71 : vector<16x512xf32>
    %73 = vector.extract_strided_slice %30 {offsets = [0, 6], sizes = [16, 1], strides = [1, 1]} : vector<16x8xf32> to vector<16x1xf32>
    %74 = vector.extract_strided_slice %37 {offsets = [6, 0], sizes = [1, 512], strides = [1, 1]} : vector<8x512xf32> to vector<1x512xf32>
    %75 = vector.broadcast %73 : vector<16x1xf32> to vector<16x512xf32>
    %76 = vector.broadcast %74 : vector<1x512xf32> to vector<16x512xf32>
    %77 = arith.mulf %75, %76 : vector<16x512xf32>
    %78 = arith.addf %72, %77 : vector<16x512xf32>
    %79 = vector.extract_strided_slice %30 {offsets = [0, 7], sizes = [16, 1], strides = [1, 1]} : vector<16x8xf32> to vector<16x1xf32>
    %80 = vector.extract_strided_slice %37 {offsets = [7, 0], sizes = [1, 512], strides = [1, 1]} : vector<8x512xf32> to vector<1x512xf32>
    %81 = vector.broadcast %79 : vector<16x1xf32> to vector<16x512xf32>
    %82 = vector.broadcast %80 : vector<1x512xf32> to vector<16x512xf32>
    %83 = arith.mulf %81, %82 : vector<16x512xf32>
    %84 = arith.addf %78, %83 : vector<16x512xf32>
    %c0_18 = arith.constant 0 : index
    %c0_19 = arith.constant 0 : index
    %c0_20 = arith.constant 0 : index
    %85 = vector.load %arg3[%c0_18, %c0_19, %c0_20] : memref<2x16x512xbf16, #tpu.memory_space<vmem>>, vector<1x16x512xbf16>
    %86 = vector.shape_cast %85 : vector<1x16x512xbf16> to vector<16x512xbf16>
    %87 = arith.extf %86 : vector<16x512xbf16> to vector<16x512xf32>
    %88 = arith.addf %84, %87 : vector<16x512xf32>
    %89 = vector.extract_strided_slice %88 {offsets = [0, 0], sizes = [8, 512], strides = [1, 1]} : vector<16x512xf32> to vector<8x512xf32>
    %90 = arith.negf %89 : vector<8x512xf32>
    %91 = math.exp %90 : vector<8x512xf32>
    %cst_21 = arith.constant 1.000000e+00 : f32
    %92 = vector.broadcast %cst_21 : f32 to vector<8x512xf32>
    %93 = arith.addf %92, %91 : vector<8x512xf32>
    %94 = arith.divf %92, %93 : vector<8x512xf32>
    %95 = vector.extract_strided_slice %88 {offsets = [8, 0], sizes = [8, 512], strides = [1, 1]} : vector<16x512xf32> to vector<8x512xf32>
    %96 = math.tanh %95 : vector<8x512xf32>
    %97 = arith.mulf %94, %96 : vector<8x512xf32>
    %98 = vector.extract_strided_slice %31 {offsets = [0, 0], sizes = [16, 1], strides = [1, 1]} : vector<16x8xf32> to vector<16x1xf32>
    %99 = vector.extract_strided_slice %97 {offsets = [0, 0], sizes = [1, 512], strides = [1, 1]} : vector<8x512xf32> to vector<1x512xf32>
    %100 = vector.broadcast %98 : vector<16x1xf32> to vector<16x512xf32>
    %101 = vector.broadcast %99 : vector<1x512xf32> to vector<16x512xf32>
    %102 = arith.mulf %100, %101 : vector<16x512xf32>
    %103 = vector.extract_strided_slice %31 {offsets = [0, 1], sizes = [16, 1], strides = [1, 1]} : vector<16x8xf32> to vector<16x1xf32>
    %104 = vector.extract_strided_slice %97 {offsets = [1, 0], sizes = [1, 512], strides = [1, 1]} : vector<8x512xf32> to vector<1x512xf32>
    %105 = vector.broadcast %103 : vector<16x1xf32> to vector<16x512xf32>
    %106 = vector.broadcast %104 : vector<1x512xf32> to vector<16x512xf32>
    %107 = arith.mulf %105, %106 : vector<16x512xf32>
    %108 = arith.addf %102, %107 : vector<16x512xf32>
    %109 = vector.extract_strided_slice %31 {offsets = [0, 2], sizes = [16, 1], strides = [1, 1]} : vector<16x8xf32> to vector<16x1xf32>
    %110 = vector.extract_strided_slice %97 {offsets = [2, 0], sizes = [1, 512], strides = [1, 1]} : vector<8x512xf32> to vector<1x512xf32>
    %111 = vector.broadcast %109 : vector<16x1xf32> to vector<16x512xf32>
    %112 = vector.broadcast %110 : vector<1x512xf32> to vector<16x512xf32>
    %113 = arith.mulf %111, %112 : vector<16x512xf32>
    %114 = arith.addf %108, %113 : vector<16x512xf32>
    %115 = vector.extract_strided_slice %31 {offsets = [0, 3], sizes = [16, 1], strides = [1, 1]} : vector<16x8xf32> to vector<16x1xf32>
    %116 = vector.extract_strided_slice %97 {offsets = [3, 0], sizes = [1, 512], strides = [1, 1]} : vector<8x512xf32> to vector<1x512xf32>
    %117 = vector.broadcast %115 : vector<16x1xf32> to vector<16x512xf32>
    %118 = vector.broadcast %116 : vector<1x512xf32> to vector<16x512xf32>
    %119 = arith.mulf %117, %118 : vector<16x512xf32>
    %120 = arith.addf %114, %119 : vector<16x512xf32>
    %121 = vector.extract_strided_slice %31 {offsets = [0, 4], sizes = [16, 1], strides = [1, 1]} : vector<16x8xf32> to vector<16x1xf32>
    %122 = vector.extract_strided_slice %97 {offsets = [4, 0], sizes = [1, 512], strides = [1, 1]} : vector<8x512xf32> to vector<1x512xf32>
    %123 = vector.broadcast %121 : vector<16x1xf32> to vector<16x512xf32>
    %124 = vector.broadcast %122 : vector<1x512xf32> to vector<16x512xf32>
    %125 = arith.mulf %123, %124 : vector<16x512xf32>
    %126 = arith.addf %120, %125 : vector<16x512xf32>
    %127 = vector.extract_strided_slice %31 {offsets = [0, 5], sizes = [16, 1], strides = [1, 1]} : vector<16x8xf32> to vector<16x1xf32>
    %128 = vector.extract_strided_slice %97 {offsets = [5, 0], sizes = [1, 512], strides = [1, 1]} : vector<8x512xf32> to vector<1x512xf32>
    %129 = vector.broadcast %127 : vector<16x1xf32> to vector<16x512xf32>
    %130 = vector.broadcast %128 : vector<1x512xf32> to vector<16x512xf32>
    %131 = arith.mulf %129, %130 : vector<16x512xf32>
    %132 = arith.addf %126, %131 : vector<16x512xf32>
    %133 = vector.extract_strided_slice %31 {offsets = [0, 6], sizes = [16, 1], strides = [1, 1]} : vector<16x8xf32> to vector<16x1xf32>
    %134 = vector.extract_strided_slice %97 {offsets = [6, 0], sizes = [1, 512], strides = [1, 1]} : vector<8x512xf32> to vector<1x512xf32>
    %135 = vector.broadcast %133 : vector<16x1xf32> to vector<16x512xf32>
    %136 = vector.broadcast %134 : vector<1x512xf32> to vector<16x512xf32>
    %137 = arith.mulf %135, %136 : vector<16x512xf32>
    %138 = arith.addf %132, %137 : vector<16x512xf32>
    %139 = vector.extract_strided_slice %31 {offsets = [0, 7], sizes = [16, 1], strides = [1, 1]} : vector<16x8xf32> to vector<16x1xf32>
    %140 = vector.extract_strided_slice %97 {offsets = [7, 0], sizes = [1, 512], strides = [1, 1]} : vector<8x512xf32> to vector<1x512xf32>
    %141 = vector.broadcast %139 : vector<16x1xf32> to vector<16x512xf32>
    %142 = vector.broadcast %140 : vector<1x512xf32> to vector<16x512xf32>
    %143 = arith.mulf %141, %142 : vector<16x512xf32>
    %144 = arith.addf %138, %143 : vector<16x512xf32>
    %145 = vector.broadcast %32 : vector<16x1xf32> to vector<16x512xf32>
    %146 = arith.addf %144, %145 : vector<16x512xf32>
    %147 = vector.extract_strided_slice %146 {offsets = [0, 0], sizes = [8, 512], strides = [1, 1]} : vector<16x512xf32> to vector<8x512xf32>
    %148 = arith.addf %33, %147 : vector<8x512xf32>
    %cst_22 = arith.constant 0.707106769 : f32
    %149 = vector.broadcast %cst_22 : f32 to vector<8x512xf32>
    %150 = arith.mulf %148, %149 : vector<8x512xf32>
    %c0_23 = arith.constant 0 : index
    %c0_24 = arith.constant 0 : index
    %151 = vector.load %arg8[%c0_23, %c0_24] : memref<8x512xf32, #tpu.memory_space<vmem>>, vector<8x512xf32>
    tpu.vector_store %arg8[%c0_23, %c0_24], %150 {strides = array<i32>} : memref<8x512xf32, #tpu.memory_space<vmem>>, vector<8x512xf32>,
    %c0_25 = arith.constant 0 : index
    %c0_26 = arith.constant 0 : index
    %152 = vector.load %arg9[%c0_25, %c0_26] : memref<8x512xf32, #tpu.memory_space<vmem>>, vector<8x512xf32>
    %153 = vector.extract_strided_slice %146 {offsets = [8, 0], sizes = [8, 512], strides = [1, 1]} : vector<16x512xf32> to vector<8x512xf32>
    %154 = arith.addf %152, %153 : vector<8x512xf32>
    %c0_27 = arith.constant 0 : index
    %c0_28 = arith.constant 0 : index
    %155 = vector.load %arg9[%c0_27, %c0_28] : memref<8x512xf32, #tpu.memory_space<vmem>>, vector<8x512xf32>
    tpu.vector_store %arg9[%c0_27, %c0_28], %154 {strides = array<i32>} : memref<8x512xf32, #tpu.memory_space<vmem>>, vector<8x512xf32>,
    %c1 = arith.constant 1 : index
    %c0_29 = arith.constant 0 : index
    %c0_30 = arith.constant 0 : index
    %156 = vector.load %arg5[%c1, %c0_29, %c0_30] : memref<2x32x9xf32, #tpu.memory_space<vmem>>, vector<1x32x9xf32>
    %157 = vector.shape_cast %156 : vector<1x32x9xf32> to vector<32x9xf32>
    %158 = vector.extract_strided_slice %157 {offsets = [0, 0], sizes = [16, 8], strides = [1, 1]} : vector<32x9xf32> to vector<16x8xf32>
    %159 = vector.extract_strided_slice %157 {offsets = [16, 0], sizes = [16, 8], strides = [1, 1]} : vector<32x9xf32> to vector<16x8xf32>
    %160 = vector.extract_strided_slice %157 {offsets = [16, 8], sizes = [16, 1], strides = [1, 1]} : vector<32x9xf32> to vector<16x1xf32>
    %c0_31 = arith.constant 0 : index
    %c0_32 = arith.constant 0 : index
    %161 = vector.load %arg8[%c0_31, %c0_32] : memref<8x512xf32, #tpu.memory_space<vmem>>, vector<8x512xf32>
    %c0_33 = arith.constant 0 : index
    %c1_34 = arith.constant 1 : index
    %c0_35 = arith.constant 0 : index
    %c0_36 = arith.constant 0 : index
    %162 = vector.load %arg4[%c0_33, %c1_34, %c0_35, %c0_36] : memref<1x2x8x1xf32, #tpu.memory_space<vmem>>, vector<1x1x8x1xf32>
    %163 = vector.shape_cast %162 : vector<1x1x8x1xf32> to vector<8x1xf32>
    %164 = vector.broadcast %163 : vector<8x1xf32> to vector<8x512xf32>
    %165 = arith.addf %161, %164 : vector<8x512xf32>
    %166 = vector.extract_strided_slice %158 {offsets = [0, 0], sizes = [16, 1], strides = [1, 1]} : vector<16x8xf32> to vector<16x1xf32>
    %167 = vector.extract_strided_slice %165 {offsets = [0, 0], sizes = [1, 512], strides = [1, 1]} : vector<8x512xf32> to vector<1x512xf32>
    %168 = vector.broadcast %166 : vector<16x1xf32> to vector<16x512xf32>
    %169 = vector.broadcast %167 : vector<1x512xf32> to vector<16x512xf32>
    %170 = arith.mulf %168, %169 : vector<16x512xf32>
    %171 = vector.extract_strided_slice %158 {offsets = [0, 1], sizes = [16, 1], strides = [1, 1]} : vector<16x8xf32> to vector<16x1xf32>
    %172 = vector.extract_strided_slice %165 {offsets = [1, 0], sizes = [1, 512], strides = [1, 1]} : vector<8x512xf32> to vector<1x512xf32>
    %173 = vector.broadcast %171 : vector<16x1xf32> to vector<16x512xf32>
    %174 = vector.broadcast %172 : vector<1x512xf32> to vector<16x512xf32>
    %175 = arith.mulf %173, %174 : vector<16x512xf32>
    %176 = arith.addf %170, %175 : vector<16x512xf32>
    %177 = vector.extract_strided_slice %158 {offsets = [0, 2], sizes = [16, 1], strides = [1, 1]} : vector<16x8xf32> to vector<16x1xf32>
    %178 = vector.extract_strided_slice %165 {offsets = [2, 0], sizes = [1, 512], strides = [1, 1]} : vector<8x512xf32> to vector<1x512xf32>
    %179 = vector.broadcast %177 : vector<16x1xf32> to vector<16x512xf32>
    %180 = vector.broadcast %178 : vector<1x512xf32> to vector<16x512xf32>
    %181 = arith.mulf %179, %180 : vector<16x512xf32>
    %182 = arith.addf %176, %181 : vector<16x512xf32>
    %183 = vector.extract_strided_slice %158 {offsets = [0, 3], sizes = [16, 1], strides = [1, 1]} : vector<16x8xf32> to vector<16x1xf32>
    %184 = vector.extract_strided_slice %165 {offsets = [3, 0], sizes = [1, 512], strides = [1, 1]} : vector<8x512xf32> to vector<1x512xf32>
    %185 = vector.broadcast %183 : vector<16x1xf32> to vector<16x512xf32>
    %186 = vector.broadcast %184 : vector<1x512xf32> to vector<16x512xf32>
    %187 = arith.mulf %185, %186 : vector<16x512xf32>
    %188 = arith.addf %182, %187 : vector<16x512xf32>
    %189 = vector.extract_strided_slice %158 {offsets = [0, 4], sizes = [16, 1], strides = [1, 1]} : vector<16x8xf32> to vector<16x1xf32>
    %190 = vector.extract_strided_slice %165 {offsets = [4, 0], sizes = [1, 512], strides = [1, 1]} : vector<8x512xf32> to vector<1x512xf32>
    %191 = vector.broadcast %189 : vector<16x1xf32> to vector<16x512xf32>
    %192 = vector.broadcast %190 : vector<1x512xf32> to vector<16x512xf32>
    %193 = arith.mulf %191, %192 : vector<16x512xf32>
    %194 = arith.addf %188, %193 : vector<16x512xf32>
    %195 = vector.extract_strided_slice %158 {offsets = [0, 5], sizes = [16, 1], strides = [1, 1]} : vector<16x8xf32> to vector<16x1xf32>
    %196 = vector.extract_strided_slice %165 {offsets = [5, 0], sizes = [1, 512], strides = [1, 1]} : vector<8x512xf32> to vector<1x512xf32>
    %197 = vector.broadcast %195 : vector<16x1xf32> to vector<16x512xf32>
    %198 = vector.broadcast %196 : vector<1x512xf32> to vector<16x512xf32>
    %199 = arith.mulf %197, %198 : vector<16x512xf32>
    %200 = arith.addf %194, %199 : vector<16x512xf32>
    %201 = vector.extract_strided_slice %158 {offsets = [0, 6], sizes = [16, 1], strides = [1, 1]} : vector<16x8xf32> to vector<16x1xf32>
    %202 = vector.extract_strided_slice %165 {offsets = [6, 0], sizes = [1, 512], strides = [1, 1]} : vector<8x512xf32> to vector<1x512xf32>
    %203 = vector.broadcast %201 : vector<16x1xf32> to vector<16x512xf32>
    %204 = vector.broadcast %202 : vector<1x512xf32> to vector<16x512xf32>
    %205 = arith.mulf %203, %204 : vector<16x512xf32>
    %206 = arith.addf %200, %205 : vector<16x512xf32>
    %207 = vector.extract_strided_slice %158 {offsets = [0, 7], sizes = [16, 1], strides = [1, 1]} : vector<16x8xf32> to vector<16x1xf32>
    %208 = vector.extract_strided_slice %165 {offsets = [7, 0], sizes = [1, 512], strides = [1, 1]} : vector<8x512xf32> to vector<1x512xf32>
    %209 = vector.broadcast %207 : vector<16x1xf32> to vector<16x512xf32>
    %210 = vector.broadcast %208 : vector<1x512xf32> to vector<16x512xf32>
    %211 = arith.mulf %209, %210 : vector<16x512xf32>
    %212 = arith.addf %206, %211 : vector<16x512xf32>
    %c1_37 = arith.constant 1 : index
    %c0_38 = arith.constant 0 : index
    %c0_39 = arith.constant 0 : index
    %213 = vector.load %arg3[%c1_37, %c0_38, %c0_39] : memref<2x16x512xbf16, #tpu.memory_space<vmem>>, vector<1x16x512xbf16>
    %214 = vector.shape_cast %213 : vector<1x16x512xbf16> to vector<16x512xbf16>
    %215 = arith.extf %214 : vector<16x512xbf16> to vector<16x512xf32>
    %216 = arith.addf %212, %215 : vector<16x512xf32>
    %217 = vector.extract_strided_slice %216 {offsets = [0, 0], sizes = [8, 512], strides = [1, 1]} : vector<16x512xf32> to vector<8x512xf32>
    %218 = arith.negf %217 : vector<8x512xf32>
    %219 = math.exp %218 : vector<8x512xf32>
    %cst_40 = arith.constant 1.000000e+00 : f32
    %220 = vector.broadcast %cst_40 : f32 to vector<8x512xf32>
    %221 = arith.addf %220, %219 : vector<8x512xf32>
    %222 = arith.divf %220, %221 : vector<8x512xf32>
    %223 = vector.extract_strided_slice %216 {offsets = [8, 0], sizes = [8, 512], strides = [1, 1]} : vector<16x512xf32> to vector<8x512xf32>
    %224 = math.tanh %223 : vector<8x512xf32>
    %225 = arith.mulf %222, %224 : vector<8x512xf32>
    %226 = vector.extract_strided_slice %159 {offsets = [0, 0], sizes = [16, 1], strides = [1, 1]} : vector<16x8xf32> to vector<16x1xf32>
    %227 = vector.extract_strided_slice %225 {offsets = [0, 0], sizes = [1, 512], strides = [1, 1]} : vector<8x512xf32> to vector<1x512xf32>
    %228 = vector.broadcast %226 : vector<16x1xf32> to vector<16x512xf32>
    %229 = vector.broadcast %227 : vector<1x512xf32> to vector<16x512xf32>
    %230 = arith.mulf %228, %229 : vector<16x512xf32>
    %231 = vector.extract_strided_slice %159 {offsets = [0, 1], sizes = [16, 1], strides = [1, 1]} : vector<16x8xf32> to vector<16x1xf32>
    %232 = vector.extract_strided_slice %225 {offsets = [1, 0], sizes = [1, 512], strides = [1, 1]} : vector<8x512xf32> to vector<1x512xf32>
    %233 = vector.broadcast %231 : vector<16x1xf32> to vector<16x512xf32>
    %234 = vector.broadcast %232 : vector<1x512xf32> to vector<16x512xf32>
    %235 = arith.mulf %233, %234 : vector<16x512xf32>
    %236 = arith.addf %230, %235 : vector<16x512xf32>
    %237 = vector.extract_strided_slice %159 {offsets = [0, 2], sizes = [16, 1], strides = [1, 1]} : vector<16x8xf32> to vector<16x1xf32>
    %238 = vector.extract_strided_slice %225 {offsets = [2, 0], sizes = [1, 512], strides = [1, 1]} : vector<8x512xf32> to vector<1x512xf32>
    %239 = vector.broadcast %237 : vector<16x1xf32> to vector<16x512xf32>
    %240 = vector.broadcast %238 : vector<1x512xf32> to vector<16x512xf32>
    %241 = arith.mulf %239, %240 : vector<16x512xf32>
    %242 = arith.addf %236, %241 : vector<16x512xf32>
    %243 = vector.extract_strided_slice %159 {offsets = [0, 3], sizes = [16, 1], strides = [1, 1]} : vector<16x8xf32> to vector<16x1xf32>
    %244 = vector.extract_strided_slice %225 {offsets = [3, 0], sizes = [1, 512], strides = [1, 1]} : vector<8x512xf32> to vector<1x512xf32>
    %245 = vector.broadcast %243 : vector<16x1xf32> to vector<16x512xf32>
    %246 = vector.broadcast %244 : vector<1x512xf32> to vector<16x512xf32>
    %247 = arith.mulf %245, %246 : vector<16x512xf32>
    %248 = arith.addf %242, %247 : vector<16x512xf32>
    %249 = vector.extract_strided_slice %159 {offsets = [0, 4], sizes = [16, 1], strides = [1, 1]} : vector<16x8xf32> to vector<16x1xf32>
    %250 = vector.extract_strided_slice %225 {offsets = [4, 0], sizes = [1, 512], strides = [1, 1]} : vector<8x512xf32> to vector<1x512xf32>
    %251 = vector.broadcast %249 : vector<16x1xf32> to vector<16x512xf32>
    %252 = vector.broadcast %250 : vector<1x512xf32> to vector<16x512xf32>
    %253 = arith.mulf %251, %252 : vector<16x512xf32>
    %254 = arith.addf %248, %253 : vector<16x512xf32>
    %255 = vector.extract_strided_slice %159 {offsets = [0, 5], sizes = [16, 1], strides = [1, 1]} : vector<16x8xf32> to vector<16x1xf32>
    %256 = vector.extract_strided_slice %225 {offsets = [5, 0], sizes = [1, 512], strides = [1, 1]} : vector<8x512xf32> to vector<1x512xf32>
    %257 = vector.broadcast %255 : vector<16x1xf32> to vector<16x512xf32>
    %258 = vector.broadcast %256 : vector<1x512xf32> to vector<16x512xf32>
    %259 = arith.mulf %257, %258 : vector<16x512xf32>
    %260 = arith.addf %254, %259 : vector<16x512xf32>
    %261 = vector.extract_strided_slice %159 {offsets = [0, 6], sizes = [16, 1], strides = [1, 1]} : vector<16x8xf32> to vector<16x1xf32>
    %262 = vector.extract_strided_slice %225 {offsets = [6, 0], sizes = [1, 512], strides = [1, 1]} : vector<8x512xf32> to vector<1x512xf32>
    %263 = vector.broadcast %261 : vector<16x1xf32> to vector<16x512xf32>
    %264 = vector.broadcast %262 : vector<1x512xf32> to vector<16x512xf32>
    %265 = arith.mulf %263, %264 : vector<16x512xf32>
    %266 = arith.addf %260, %265 : vector<16x512xf32>
    %267 = vector.extract_strided_slice %159 {offsets = [0, 7], sizes = [16, 1], strides = [1, 1]} : vector<16x8xf32> to vector<16x1xf32>
    %268 = vector.extract_strided_slice %225 {offsets = [7, 0], sizes = [1, 512], strides = [1, 1]} : vector<8x512xf32> to vector<1x512xf32>
    %269 = vector.broadcast %267 : vector<16x1xf32> to vector<16x512xf32>
    %270 = vector.broadcast %268 : vector<1x512xf32> to vector<16x512xf32>
    %271 = arith.mulf %269, %270 : vector<16x512xf32>
    %272 = arith.addf %266, %271 : vector<16x512xf32>
    %273 = vector.broadcast %160 : vector<16x1xf32> to vector<16x512xf32>
    %274 = arith.addf %272, %273 : vector<16x512xf32>
    %275 = vector.extract_strided_slice %274 {offsets = [0, 0], sizes = [8, 512], strides = [1, 1]} : vector<16x512xf32> to vector<8x512xf32>
    %276 = arith.addf %161, %275 : vector<8x512xf32>
    %cst_41 = arith.constant 0.707106769 : f32
    %277 = vector.broadcast %cst_41 : f32 to vector<8x512xf32>
    %278 = arith.mulf %276, %277 : vector<8x512xf32>
    %c0_42 = arith.constant 0 : index
    %c0_43 = arith.constant 0 : index
    %279 = vector.load %arg8[%c0_42, %c0_43] : memref<8x512xf32, #tpu.memory_space<vmem>>, vector<8x512xf32>
    tpu.vector_store %arg8[%c0_42, %c0_43], %278 {strides = array<i32>} : memref<8x512xf32, #tpu.memory_space<vmem>>, vector<8x512xf32>,
    %c0_44 = arith.constant 0 : index
    %c0_45 = arith.constant 0 : index
    %280 = vector.load %arg9[%c0_44, %c0_45] : memref<8x512xf32, #tpu.memory_space<vmem>>, vector<8x512xf32>
    %281 = vector.extract_strided_slice %274 {offsets = [8, 0], sizes = [8, 512], strides = [1, 1]} : vector<16x512xf32> to vector<8x512xf32>
    %282 = arith.addf %280, %281 : vector<8x512xf32>
    %c0_46 = arith.constant 0 : index
    %c0_47 = arith.constant 0 : index
    %283 = vector.load %arg9[%c0_46, %c0_47] : memref<8x512xf32, #tpu.memory_space<vmem>>, vector<8x512xf32>
    tpu.vector_store %arg9[%c0_46, %c0_47], %282 {strides = array<i32>} : memref<8x512xf32, #tpu.memory_space<vmem>>, vector<8x512xf32>,
    %c0_48 = arith.constant 0 : index
    %c0_49 = arith.constant 0 : index
    %284 = vector.load %arg9[%c0_48, %c0_49] : memref<8x512xf32, #tpu.memory_space<vmem>>, vector<8x512xf32>
    %cst_50 = arith.constant 0.707106769 : f32
    %285 = vector.broadcast %cst_50 : f32 to vector<8x512xf32>
    %286 = arith.mulf %284, %285 : vector<8x512xf32>
    %287 = vector.extract_strided_slice %3 {offsets = [0, 0], sizes = [8, 1], strides = [1, 1]} : vector<8x8xf32> to vector<8x1xf32>
    %288 = vector.extract_strided_slice %286 {offsets = [0, 0], sizes = [1, 512], strides = [1, 1]} : vector<8x512xf32> to vector<1x512xf32>
    %289 = vector.broadcast %287 : vector<8x1xf32> to vector<8x512xf32>
    %290 = vector.broadcast %288 : vector<1x512xf32> to vector<8x512xf32>
    %291 = arith.mulf %289, %290 : vector<8x512xf32>
    %292 = vector.extract_strided_slice %3 {offsets = [0, 1], sizes = [8, 1], strides = [1, 1]} : vector<8x8xf32> to vector<8x1xf32>
    %293 = vector.extract_strided_slice %286 {offsets = [1, 0], sizes = [1, 512], strides = [1, 1]} : vector<8x512xf32> to vector<1x512xf32>
    %294 = vector.broadcast %292 : vector<8x1xf32> to vector<8x512xf32>
    %295 = vector.broadcast %293 : vector<1x512xf32> to vector<8x512xf32>
    %296 = arith.mulf %294, %295 : vector<8x512xf32>
    %297 = arith.addf %291, %296 : vector<8x512xf32>
    %298 = vector.extract_strided_slice %3 {offsets = [0, 2], sizes = [8, 1], strides = [1, 1]} : vector<8x8xf32> to vector<8x1xf32>
    %299 = vector.extract_strided_slice %286 {offsets = [2, 0], sizes = [1, 512], strides = [1, 1]} : vector<8x512xf32> to vector<1x512xf32>
    %300 = vector.broadcast %298 : vector<8x1xf32> to vector<8x512xf32>
    %301 = vector.broadcast %299 : vector<1x512xf32> to vector<8x512xf32>
    %302 = arith.mulf %300, %301 : vector<8x512xf32>
    %303 = arith.addf %297, %302 : vector<8x512xf32>
    %304 = vector.extract_strided_slice %3 {offsets = [0, 3], sizes = [8, 1], strides = [1, 1]} : vector<8x8xf32> to vector<8x1xf32>
    %305 = vector.extract_strided_slice %286 {offsets = [3, 0], sizes = [1, 512], strides = [1, 1]} : vector<8x512xf32> to vector<1x512xf32>
    %306 = vector.broadcast %304 : vector<8x1xf32> to vector<8x512xf32>
    %307 = vector.broadcast %305 : vector<1x512xf32> to vector<8x512xf32>
    %308 = arith.mulf %306, %307 : vector<8x512xf32>
    %309 = arith.addf %303, %308 : vector<8x512xf32>
    %310 = vector.extract_strided_slice %3 {offsets = [0, 4], sizes = [8, 1], strides = [1, 1]} : vector<8x8xf32> to vector<8x1xf32>
    %311 = vector.extract_strided_slice %286 {offsets = [4, 0], sizes = [1, 512], strides = [1, 1]} : vector<8x512xf32> to vector<1x512xf32>
    %312 = vector.broadcast %310 : vector<8x1xf32> to vector<8x512xf32>
    %313 = vector.broadcast %311 : vector<1x512xf32> to vector<8x512xf32>
    %314 = arith.mulf %312, %313 : vector<8x512xf32>
    %315 = arith.addf %309, %314 : vector<8x512xf32>
    %316 = vector.extract_strided_slice %3 {offsets = [0, 5], sizes = [8, 1], strides = [1, 1]} : vector<8x8xf32> to vector<8x1xf32>
    %317 = vector.extract_strided_slice %286 {offsets = [5, 0], sizes = [1, 512], strides = [1, 1]} : vector<8x512xf32> to vector<1x512xf32>
    %318 = vector.broadcast %316 : vector<8x1xf32> to vector<8x512xf32>
    %319 = vector.broadcast %317 : vector<1x512xf32> to vector<8x512xf32>
    %320 = arith.mulf %318, %319 : vector<8x512xf32>
    %321 = arith.addf %315, %320 : vector<8x512xf32>
    %322 = vector.extract_strided_slice %3 {offsets = [0, 6], sizes = [8, 1], strides = [1, 1]} : vector<8x8xf32> to vector<8x1xf32>
    %323 = vector.extract_strided_slice %286 {offsets = [6, 0], sizes = [1, 512], strides = [1, 1]} : vector<8x512xf32> to vector<1x512xf32>
    %324 = vector.broadcast %322 : vector<8x1xf32> to vector<8x512xf32>
    %325 = vector.broadcast %323 : vector<1x512xf32> to vector<8x512xf32>
    %326 = arith.mulf %324, %325 : vector<8x512xf32>
    %327 = arith.addf %321, %326 : vector<8x512xf32>
    %328 = vector.extract_strided_slice %3 {offsets = [0, 7], sizes = [8, 1], strides = [1, 1]} : vector<8x8xf32> to vector<8x1xf32>
    %329 = vector.extract_strided_slice %286 {offsets = [7, 0], sizes = [1, 512], strides = [1, 1]} : vector<8x512xf32> to vector<1x512xf32>
    %330 = vector.broadcast %328 : vector<8x1xf32> to vector<8x512xf32>
    %331 = vector.broadcast %329 : vector<1x512xf32> to vector<8x512xf32>
    %332 = arith.mulf %330, %331 : vector<8x512xf32>
    %333 = arith.addf %327, %332 : vector<8x512xf32>
    %334 = vector.broadcast %4 : vector<8x1xf32> to vector<8x512xf32>
    %335 = arith.addf %333, %334 : vector<8x512xf32>
    %cst_51 = arith.constant 0.000000e+00 : f32
    %336 = vector.broadcast %cst_51 : f32 to vector<8x512xf32>
    %337 = arith.maximumf %335, %336 : vector<8x512xf32>
    %338 = vector.broadcast %5 : vector<8x1xf32> to vector<8x512xf32>
    %339 = arith.mulf %338, %337 : vector<8x512xf32>
    %cst_52 = arith.constant dense<0.000000e+00> : vector<512xf32>
    %340 = vector.multi_reduction <add>, %339, %cst_52 [0] : vector<8x512xf32> to vector<512xf32>
    %341 = vector.shape_cast %340 : vector<512xf32> to vector<1x512xf32>
    %342 = vector.broadcast %6 : vector<1x1xf32> to vector<1x512xf32>
    %343 = arith.addf %341, %342 : vector<1x512xf32>
    %c0_53 = arith.constant 0 : index
    %c0_54 = arith.constant 0 : index
    %c0_55 = arith.constant 0 : index
    %344 = vector.load %arg7[%c0_53, %c0_54, %c0_55] : memref<1x1x512xf32, #tpu.memory_space<vmem>>, vector<1x1x512xf32>
    %345 = vector.shape_cast %344 : vector<1x1x512xf32> to vector<1x512xf32>
    %346 = vector.shape_cast %343 : vector<1x512xf32> to vector<1x1x512xf32>
    tpu.vector_store %arg7[%c0_53, %c0_54, %c0_55], %346 {strides = array<i32>} : memref<1x1x512xf32, #tpu.memory_space<vmem>>, vector<1x1x512xf32>,
    return
  }
  func.func @transform_0(%arg0: i32, %arg1: i32) -> (i32, i32, i32) {
    %c0_i32 = arith.constant 0 : i32
    %c0_i32_0 = arith.constant 0 : i32
    return %arg1, %c0_i32, %arg0 : i32, i32, i32
  }
  func.func @transform_1(%arg0: i32, %arg1: i32) -> (i32, i32, i32) {
    %c0_i32 = arith.constant 0 : i32
    %c0_i32_0 = arith.constant 0 : i32
    %c0_i32_1 = arith.constant 0 : i32
    return %c0_i32, %c0_i32_0, %arg0 : i32, i32, i32
  }
  func.func @transform_2(%arg0: i32, %arg1: i32) -> (i32, i32, i32, i32) {
    %c0_i32 = arith.constant 0 : i32
    %c0_i32_0 = arith.constant 0 : i32
    %c0_i32_1 = arith.constant 0 : i32
    %c0_i32_2 = arith.constant 0 : i32
    return %arg1, %c0_i32, %c0_i32_0, %c0_i32_1 : i32, i32, i32, i32
  }
  func.func @transform_3(%arg0: i32, %arg1: i32) -> (i32, i32, i32) {
    %c0_i32 = arith.constant 0 : i32
    %c0_i32_0 = arith.constant 0 : i32
    %c0_i32_1 = arith.constant 0 : i32
    %c0_i32_2 = arith.constant 0 : i32
    return %c0_i32, %c0_i32_0, %c0_i32_1 : i32, i32, i32
  }
  func.func @transform_4(%arg0: i32, %arg1: i32) -> (i32, i32) {
    %c0_i32 = arith.constant 0 : i32
    %c0_i32_0 = arith.constant 0 : i32
    %c0_i32_1 = arith.constant 0 : i32
    return %c0_i32, %c0_i32_0 : i32, i32
  }
  func.func @transform_5(%arg0: i32, %arg1: i32) -> (i32, i32, i32) {
    %c0_i32 = arith.constant 0 : i32
    %c0_i32_0 = arith.constant 0 : i32
    return %arg1, %c0_i32, %arg0 : i32, i32, i32
  }
}

</mosaic_0001>

<bundles_post_ra>
// kernel: timba_forward.1
= control target key start
LH: loop header
LB: loop body
LE: loop exit
PB: predicated region body
PF: predicated region fallthrough
CT: control target
= control target key end

     0   :  { %10 = vsyncpa [#allocation6], 0  ;;  %s4087_s0 = inlined_call_operand.vmem [shape: bf16[2,2,1024], index: 0, kind: input, shape index: {}]   ;;  %s4088_s1 = inlined_call_operand.vmem [shape: bf16[2,16,1024], index: 1, kind: input, shape index: {}]   ;;  %s4089_s2 = inlined_call_operand.vmem [shape: f32[2,2,8,1], index: 2, kind: input, shape index: {}]   ;;  %s4090_s3 = inlined_call_operand.vmem [shape: f32[2,32,9], index: 3, kind: input, shape index: {}]   ;;  %s4091_s4 = inlined_call_operand.vmem [shape: f32[8,14], index: 4, kind: input, shape index: {}]   ;;  %s4092_s5 = inlined_call_operand.hbm [shape: f32[2,1,1024], index: 5, kind: output, shape index: {}]  }
   0x1   :  { %12 = vsyncpa [#allocation6 + $0x1], 0  ;;  %s2775_s18 = smov 0   ;;  %s2777_s19 = smov 0  }
   0x2   :  { %s2779_s20 = smov 0   ;;  %s2781_s21 = smov 0  }
   0x3   :  { %s2783_s22 = smov 0   ;;  %s2785_s23 = smov 0  }
   0x4   :  { %s2787_s24 = smov 0   ;;  %s2789_s25 = smov 0  }
   0x5   :  { %s2791_s26 = smov 0   ;;  %s2793_s27 = smov 0  }
   0x6 LB: > { %s2359_s28 = sadd.s32 4294967295, %s2727_s27   ;;  %s2360_s29 = sadd.s32 4294967294, %s2727_s27   ;;  %s2727_s27 = sphi %s2793_s27, %s18_s27   ;;  %s2723_s26 = sphi %s2791_s26, %s4253_s26   ;;  %s2719_s25 = sphi %s2789_s25, %s4252_s25   ;;  %s2715_s24 = sphi %s2787_s24, %s4251_s24   ;;  %s2711_s23 = sphi %s2785_s23, %s4250_s23   ;;  %s2707_s22 = sphi %s2783_s22, %s4249_s22   ;;  %s2703_s21 = sphi %s2781_s21, %s4248_s21   ;;  %s2699_s20 = sphi %s2779_s20, %s4247_s20   ;;  %s2695_s19 = sphi %s2777_s19, %s4246_s19   ;;  %s2691_s18 = sphi %s2775_s18, %s4245_s18  }
   0x7   : > { %s27_s30 = sadd.s32 1, %s2719_s25  ;;  %s30_s6 = sadd.s32 1, %s2723_s26 }
   0x8   : > { %p28_p0 = scmp.ge.s32.totalorder %s27_s30, 2  ;;  %s65_s7 = sadd.s32 1, %s2707_s22 }
   0x9   : > { %p72_p1 = scmp.ne.s32.totalorder %s2707_s22, %s2703_s21  ;;  %p73_p2 = scmp.eq.s32.totalorder %s2727_s27, 0 }
   0xa   : > { %s4255_s30 = smov (%p28_p0, %s27_s30), 0  ;;  %s4257_s6 = smov (!%p28_p0, %s30_s6), %s2723_s26 }
   0xb   : > { %p2836_p3 = por %p73_p2, %p72_p1  ;;  %s156_s9 = ssub.s32 %s2719_s25, %s4255_s30 }
   0xc   : > { %p32_p4 = scmp.ge.s32.totalorder %s4257_s6, 2  ;;  %s161_s10 = sadd.s32 1, %s2699_s20 }
   0xd   : > { %p171_p5 = scmp.ne.s32.totalorder %s2699_s20, %s2695_s19  ;;  %p172_p6 = scmp.eq.s32.totalorder %s2359_s28, 3 }
   0xe   : > { %s4259_s6 = smov (%p32_p4, %s4257_s6), 0  ;;  %p177_p8 = scmp.ne.s32.totalorder %s2695_s19, %s2691_s18 }
   0xf   : > { %p2847_p7 = por %p172_p6, %p171_p5  ;;  %s62_s12 = ssub.s32 %s2723_s26, %s4259_s6 }
  0x10   : > { %p178_p9 = scmp.eq.s32.totalorder %s2360_s29, 3  ;;  %p63_p10 = scmp.eq.s32.totalorder %s62_s12, 0 }
  0x11   : > { %s158_s13 = sor.u32 %s156_s9, %s62_s12  ;;  %p2362_p13 = scmp.ge.s32.totalorder %s2727_s27, 4 }
  0x12   : > { %p159_p11 = scmp.eq.s32.totalorder %s158_s13, 0  ;;  %p2855_p12 = por %p178_p9, %p177_p8 }
  0x13   : > { %s2860_s15 = scalar_select %p63_p10, %s2707_s22, %s65_s7  }
  0x14   : > { %s2863_s16 = scalar_select %p159_p11, %s2699_s20, %s161_s10  }
  0x15   : > { %200 = sbr.rel (%p2362_p13) target bundleno = 36 (0x24), region = 24 }
  0x1c   : > { %215 = sbr.rel (!%p2836_p3) target bundleno = 36 (0x24), region = 32  ;;  %s217_s17 = sand.u32 (%p2836_p3), 1, %s2707_s22  }
  0x1d   : > { %s2396_s28 = sshll.u32 (%p2836_p3), %s2723_s26, 4  ;;  %s2363_s29 = sshll.u32 (%p2836_p3), %s217_s17, 6 }
  0x1e   : > { %s222_s13 = scalar_lea.vmem (%p2836_p3), %s4088_s1, %s2396_s28  ;;  %s219_s7 = scalar_lea.vmem (%p2836_p3), [#allocation4], %s2363_s29 }
  0x1f   : > { %v235_v0 = vld [vmem:[%s222_s13] sm:$0xff] (%p2836_p3)  ;;  %v237_v1 = vld [vmem:[%s222_s13 + $0x8] sm:$0xff] (%p2836_p3) }
  0x20   : > { %v239_v2 = vld [vmem:[%s222_s13 + $0x20] sm:$0xff] (%p2836_p3)  ;;  %236 = vst [vmem:[%s219_s7] sm:$0xff] (%p2836_p3), %v235_v0  ;;  %238 = vst [vmem:[%s219_s7 + $0x8] sm:$0xff] (%p2836_p3), %v237_v1  ;;  %v241_v3 = vld [vmem:[%s222_s13 + $0x28] sm:$0xff] (%p2836_p3) }
  0x21   : > { %240 = vst [vmem:[%s219_s7 + $0x10] sm:$0xff] (%p2836_p3), %v239_v2  ;;  %v243_v4 = vld [vmem:[%s222_s13 + $0x40] sm:$0xff] (%p2836_p3)  ;;  %v245_v5 = vld [vmem:[%s222_s13 + $0x48] sm:$0xff] (%p2836_p3)  ;;  %242 = vst [vmem:[%s219_s7 + $0x18] sm:$0xff] (%p2836_p3), %v241_v3 }
  0x22   : > { %244 = vst [vmem:[%s219_s7 + $0x20] sm:$0xff] (%p2836_p3), %v243_v4  ;;  %246 = vst [vmem:[%s219_s7 + $0x28] sm:$0xff] (%p2836_p3), %v245_v5  ;;  %v247_v6 = vld [vmem:[%s222_s13 + $0x60] sm:$0xff] (%p2836_p3)  ;;  %v249_v7 = vld [vmem:[%s222_s13 + $0x68] sm:$0xff] (%p2836_p3) }
  0x23   : > { %248 = vst [vmem:[%s219_s7 + $0x30] sm:$0xff] %v247_v6  ;;  %250 = vst [vmem:[%s219_s7 + $0x38] sm:$0xff] %v249_v7 }
  0x24 PF: > { %p2366_p0 = scmp.ge.s32.totalorder %s2727_s27, 1  ;;  %p263_p1 = scmp.lt.s32.totalorder %s2727_s27, 5 }
  0x26   : > { %p264_p2 = pnand %p2366_p0, %p263_p1 }
  0x28   : > { %267 = sbr.rel (%p264_p2) target bundleno = 460 (0x1cc), region = 59 }
  0x2f   : > { %v2878_v8 = vld [vmem:[%s4091_s4] sm:$0xff]  ;;  %p311_p3 = scmp.lt.s32.totalorder %s2711_s23, 1  ;;  %v2729_v9 = vmov 2   ;;  %v2730_v10 = vmov 1   ;;  %v2731_v11 = vmov 0   ;;  %v444_v13 = vld [vmem:[%s4090_s3 + $0x8] sm:$0xff]  ;;  %v4093_v27 = vlaneseq }
  0x30   : > { %2502 = vset.pattern.permute.xlu1 %v2729_v9  ;;  %2500 = vset.pattern.permute.xlu0 %v2730_v10  ;;  %v443_v14 = vld [vmem:[%s4090_s3] sm:$0xff]  ;;  %v4106_v15 = vmov 3   ;;  %v4101_v16 = vmov 6   ;;  %v4103_v17 = vmov 5   ;;  %v445_v18 = vld [vmem:[%s4090_s3 + $0x10] sm:$0xff]  ;;  %v4105_v19 = vmov 4  }
  0x31   : > { %424 = vperm.xlu1 %2502, %v2878_v8   ;;  %376 = vperm.xlu0 %2500, %v2878_v8   ;;  %s2886_s17 = scalar_select %p311_p3, %s2711_s23, 1  ;;  %v4100_v20 = vmov 7   ;;  %v2923_v21 = vld [vmem:[%s4090_s3 + $0x20] sm:$0xff]  ;;  %v2936_v22 = vld [vmem:[%s4090_s3 + $0x18] sm:$0xff]  ;;  %v2945_v23 = vld [vmem:[%s4090_s3 + $0x28] sm:$0xff]  ;;  %v4098_v25 = vmov 8  }
  0x32   : > { %v2961_v24 = vld [vmem:[%s4090_s3 + $0x38] sm:$0xff]  ;;  %s2974_s13 = sshll.u32 %s2715_s24, 2  ;;  %v2995_v28 = vshrl.u32 %v4093_v27, 7  ;;  %v2738_v30 = vmov 10   ;;  %s2392_s8 = sshll.u32 %s2711_s23, 3 }
  0x33   : > { %s2397_s28 = sshll.u32 %s2886_s17, 4  ;;  %p313_p4 = scmp.lt.s32.totalorder %s2974_s13, 7 }
  0x34   : > { %s2892_s12 = scalar_lea.vmem %s4089_s2, %s2397_s28  ;;  %s2370_s7 = sshll.u32 %s2886_s17, 3  ;;  %4152 = vst [vmem:[#allocation8_spill] sm:$0xff] %v2995_v28  ;;  %v3001_v31 = vsub.s32 1, %v2995_v28  ;;  %v3004_v32 = vsub.s32 3, %v2995_v28  ;;  %v3007_v33 = vsub.s32 5, %v2995_v28  ;;  %v3010_v34 = vsub.s32 7, %v2995_v28 }
  0x35   : > { %2503 = vset.pattern.permute.xlu1 %v2731_v11  ;;  %2501 = vset.pattern.permute.xlu0 %v2731_v11  ;;  %v451_v12 = vld [vmem:[%s2892_s12] sm:$0xff]  ;;  %v2381_v26 = vld [vmem:[%s2892_s12 + $0x8] sm:$0xff]  ;;  %s314_s12 = scalar_select %p313_p4, %s2974_s13, 7  ;;  %v3013_v36 = vsub.s32 0, %v2995_v28  ;;  %v3016_v37 = vsub.s32 2, %v2995_v28  ;;  %v3019_v38 = vsub.s32 4, %v2995_v28 }
  0x36   : > { %331 = vperm.xlu0 %2501, %v2878_v8   ;;  %454 = vperm.xlu1 %2503, %v451_v12   ;;  %4153 = vst [vmem:[#allocation9_spill] sm:$0xff] %v3001_v31  ;;  %4154 = vst [vmem:[#allocation10_spill] sm:$0xff] %v3004_v32  ;;  %v3022_v39 = vsub.s32 6, %v2995_v28  ;;  %s270_s28 = sand.u32 1, %s2703_s21   ;;  %s2249_s10 = sadd.s32 %s2392_s8, %s2974_s13 }
  0x37   : > { %s316_s24 = sadd.s32 %s2370_s7, %s314_s12  ;;  %4155 = vst [vmem:[#allocation11_spill] sm:$0xff] %v3007_v33  ;;  %4156 = vst [vmem:[#allocation12_spill] sm:$0xff] %v3013_v36  ;;  %s2367_s21 = sshll.u32 %s270_s28, 6 }
  0x38   : > { %s317_s17 = scalar_lea.vmem %s4087_s0, %s316_s24  ;;  %4157 = vst [vmem:[#allocation13_spill] sm:$0xff] %v3016_v37  ;;  %4158 = vst [vmem:[#allocation14_spill] sm:$0xff] %v3019_v38  ;;  %s3099_s29 = scalar_lea.vmem [#allocation4], %s2367_s21 }
  0x39   : > { %v327_v29 = vld [vmem:[%s317_s17] sm:$0xf]  ;;  %4159 = vst [vmem:[#allocation15_spill] sm:$0xff] %v3022_v39  ;;  %s307_s7 = sand.u32 1, %s2695_s19   ;;  %s2393_s17 = sshll.u32 %s2249_s10, 4 }
  0x3a   : > { %468 = vperm.xlu0 %2501, %v444_v13   ;;  %463 = vperm.xlu1 %2503, %v443_v14   ;;  %v328_v35 = vunpack.c.l.bf16 %v327_v29  ;;  %s2368_s24 = sshll.u32 %s307_s7, 2  ;;  %s4028_s23 = scalar_lea.hbm %s4092_s5, %s2393_s17 }
  0x3b   : > { %s309_s28 = scalar_lea.vmem [#allocation5], %s2368_s24  ;;  %s2237_s13 = scalar_lea.sflag [#allocation6], %s307_s7 }
  0x3c   : > { %v382_v40 = vrot.slane %v328_v35, %v3001_v31  ;;  %v386_v41 = vrot.slane %v328_v35, %v3004_v32  ;;  %v390_v42 = vrot.slane %v328_v35, %v3007_v33  ;;  %v394_v43 = vrot.slane %v328_v35, %v3010_v34  ;;  %s2253_s21 = sshll.u32 %s309_s28, 4  ;;  %s2744_s24 = smov [#allocation5]   ;;  %s4030_s21 = int_to_ptr.vmem [resolvable:$true] %s2253_s21 }
  0x3d   : > { %v338_v44 = vrot.slane %v328_v35, %v3013_v36  ;;  %v342_v45 = vrot.slane %v328_v35, %v3016_v37  ;;  %v346_v46 = vrot.slane %v328_v35, %v3019_v38  ;;  %v350_v47 = vrot.slane %v328_v35, %v3022_v39  ;;  %s2617_s12 = scalar_lea.vmem %s4030_s21, 64  ;;  %s2621_s8 = sshll.u32 %s2744_s24, 4  ;;  %s2622_s8 = int_to_ptr.vmem [resolvable:$false] %s2621_s8 }
  0x3e   : > { %2505 = vset.pattern.permute.xlu0 %v2729_v9  ;;  %2504 = vset.pattern.permute.xlu1 %v2730_v10  ;;  %v402_v50 = vrot.slane %v382_v40, %v3001_v31  ;;  %v406_v51 = vrot.slane %v386_v41, %v3001_v31  ;;  %v410_v52 = vrot.slane %v390_v42, %v3001_v31  ;;  %v2739_v41 = vmov 13   ;;  %p2618_p5 = scmp.ne.s32.totalorder %s4030_s21, %s2617_s12  ;;  %s2623_s10 = scalar_lea.vmem %s2622_s8, 128 }
  0x3f   : > { %536 = vperm.xlu0 %2505, %v443_v14   ;;  %496 = vperm.xlu1 %2504, %v443_v14   ;;  %v414_v53 = vrot.slane %v394_v43, %v3001_v31  ;;  %v358_v54 = vrot.slane %v338_v44, %v3013_v36  ;;  %v362_v55 = vrot.slane %v342_v45, %v3013_v36  ;;  %p2624_p9 = scmp.lt.s32.totalorder %s4030_s21, %s2622_s8  ;;  %p2625_p10 = scmp.lt.s32.totalorder %s2623_s10, %s2617_s12 }
  0x40   : > { %v366_v56 = vrot.slane %v346_v46, %v3013_v36  ;;  %v370_v57 = vrot.slane %v350_v47, %v3013_v36  ;;  %p2619_p6 = pnand %p2618_p5, %p2847_p7 }
  0x41   : > { %p2626_p11 = por %p2625_p10, %p2624_p9 }
  0x42   : > { %p2620_p8 = pneg %p2619_p6 }
  0x43   : > { %2508 = vset.pattern.permute.xlu0 %v4106_v15  ;;  %500 = vperm.xlu1 %2504, %v444_v13  }
  0x44   : > { %580 = vperm.xlu0 %2508, %v444_v13   ;;  %p2627_p13 = pnand %p2626_p11, %p2620_p8 }
  0x47   : > { %2506 = vset.pattern.permute.xlu1 %v2729_v9 }
  0x48   : > { %2511 = vset.pattern.permute.xlu0 %v4101_v16  ;;  %540 = vperm.xlu1 %2506, %v444_v13  }
  0x49   : > { %696 = vperm.xlu0 %2511, %v443_v14  }
  0x4c   : > { %2507 = vset.pattern.permute.xlu1 %v4106_v15 }
  0x4d   : > { %2514 = vset.pattern.permute.xlu0 %v4103_v17  ;;  %576 = vperm.xlu1 %2507, %v443_v14  }
  0x4e   : > { %660 = vperm.xlu0 %2514, %v444_v13  }
  0x51   : > { %2509 = vset.pattern.permute.xlu1 %v4105_v19 }
  0x52   : > { %2521 = vset.pattern.permute.xlu0 %v4105_v19  ;;  %616 = vperm.xlu1 %2509, %v443_v14  }
  0x53   : > { %982 = vperm.xlu0 %2521, %v445_v18  }
  0x56   : > { %2510 = vset.pattern.permute.xlu1 %v4103_v17 }
  0x57   : > { %2524 = vset.pattern.permute.xlu0 %v4100_v20  ;;  %656 = vperm.xlu1 %2510, %v443_v14  }
  0x58   : > { %1102 = vperm.xlu0 %2524, %v445_v18  }
  0x5b   : > { %2512 = vset.pattern.permute.xlu1 %v4100_v20 }
  0x5c   : > { %2525 = vset.pattern.permute.xlu0 %v2731_v11  ;;  %736 = vperm.xlu1 %2512, %v443_v14  }
  0x5d   : > { %829 = vperm.xlu0 %2525, %v445_v18  }
  0x60   : > { %2513 = vset.pattern.permute.xlu1 %v4105_v19 }
  0x61   : > { %1203 = vperm.xlu0 %2525, %v2923_v21   ;;  %620 = vperm.xlu1 %2513, %v444_v13  }
  0x65   : > { %2530 = vset.pattern.permute.xlu0 %v4106_v15  ;;  %2515 = vset.pattern.permute.xlu1 %v4101_v16 }
  0x66   : > { %1316 = vperm.xlu0 %2530, %v2923_v21   ;;  %700 = vperm.xlu1 %2515, %v444_v13  }
  0x6a   : > { %2533 = vset.pattern.permute.xlu0 %v4101_v16  ;;  %2516 = vset.pattern.permute.xlu1 %v4100_v20 }
  0x6b   : > { %1436 = vperm.xlu0 %2533, %v2923_v21   ;;  %740 = vperm.xlu1 %2516, %v444_v13  }
  0x6f   : > { %2534 = vset.pattern.permute.xlu0 %v2730_v10  ;;  %2517 = vset.pattern.permute.xlu1 %v2731_v11 }
  0x70   : > { %866 = vperm.xlu0 %2534, %v2936_v22   ;;  %834 = vperm.xlu1 %2517, %v2936_v22  }
  0x74   : > { %1240 = vperm.xlu0 %2534, %v2945_v23   ;;  %2518 = vset.pattern.permute.xlu1 %v2730_v10 }
  0x75   : > { %862 = vperm.xlu1 %2518, %v445_v18  }
  0x78   : > { %2539 = vset.pattern.permute.xlu0 %v4105_v19 }
  0x79   : > { %1360 = vperm.xlu0 %2539, %v2945_v23   ;;  %2519 = vset.pattern.permute.xlu1 %v2729_v9 }
  0x7a   : > { %902 = vperm.xlu1 %2519, %v445_v18  }
  0x7d   : > { %2542 = vset.pattern.permute.xlu0 %v4100_v20 }
  0x7e   : > { %1480 = vperm.xlu0 %2542, %v2945_v23   ;;  %2520 = vset.pattern.permute.xlu1 %v4106_v15 }
  0x7f   : > { %942 = vperm.xlu1 %2520, %v445_v18  }
  0x82   : > { %2545 = vset.pattern.permute.xlu0 %v2729_v9 }
  0x83   : > { %906 = vperm.xlu0 %2545, %v2936_v22   ;;  %2522 = vset.pattern.permute.xlu1 %v4103_v17 }
  0x84   : > { %1022 = vperm.xlu1 %2522, %v445_v18  }
  0x87   : > { %2548 = vset.pattern.permute.xlu0 %v4106_v15 }
  0x88   : > { %1687 = vperm.xlu0 %2548, %v2961_v24   ;;  %2523 = vset.pattern.permute.xlu1 %v4101_v16 }
  0x89   : > { %1062 = vperm.xlu1 %2523, %v445_v18  }
  0x8c   : > { %2550 = vset.pattern.permute.xlu0 %v4103_v17 }
  0x8d   : > { %1026 = vperm.xlu0 %2550, %v2936_v22   ;;  %2526 = vset.pattern.permute.xlu1 %v4098_v25 }
  0x8e   : > { %1142 = vperm.xlu1 %2526, %v445_v18  }
  0x91   : > { %2553 = vset.pattern.permute.xlu0 %v4101_v16 }
  0x92   : > { %2527 = vset.pattern.permute.xlu1 %v2731_v11  ;;  %1807 = vperm.xlu0 %2553, %v2961_v24  }
  0x93   : > { %1194 = vperm.xlu1 %2527, %v2381_v26  }
  0x96   : > { %2555 = vset.pattern.permute.xlu0 %v4098_v25 }
  0x97   : > { %2528 = vset.pattern.permute.xlu1 %v2730_v10  ;;  %1146 = vperm.xlu0 %2555, %v2936_v22  }
  0x98   : > { %1236 = vperm.xlu1 %2528, %v2923_v21  }
  0x9b   : > { %2558 = vset.pattern.permute.xlu0 %v4105_v19 }
  0x9c   : > { %2529 = vset.pattern.permute.xlu1 %v2729_v9  ;;  %1955 = vperm.xlu0 %2558, %v2878_v8  }
  0x9d   : > { %1276 = vperm.xlu1 %2529, %v2923_v21  }
  0xa0   : > { %2561 = vset.pattern.permute.xlu0 %v4100_v20 }
  0xa1   : > { %2531 = vset.pattern.permute.xlu1 %v4105_v19  ;;  %2039 = vperm.xlu0 %2561, %v2878_v8  }
  0xa2   : > { %1356 = vperm.xlu1 %2531, %v2923_v21  }
  0xa5   : > { %2564 = vset.pattern.permute.xlu0 %v2738_v30 }
  0xa6   : > { %2532 = vset.pattern.permute.xlu1 %v4103_v17  ;;  %2123 = vperm.xlu0 %2564, %v2878_v8  }
  0xa7   : > { %1396 = vperm.xlu1 %2532, %v2923_v21  }
  0xaa   : > { %2567 = vset.pattern.permute.xlu0 %v2739_v41 }
  0xab   : > { %2535 = vset.pattern.permute.xlu1 %v4100_v20  ;;  %2195 = vperm.xlu0 %2567, %v2878_v8  }
  0xac   : > { %1476 = vperm.xlu1 %2535, %v2923_v21  }
  0xb0   : > { %v425_v48 = vpop.permute.xlu1 %424  ;;  %2536 = vset.pattern.permute.xlu1 %v2731_v11  ;;  %v377_v49 = vpop.permute.xlu0 %376 }
  0xb1   : > { %1208 = vperm.xlu1 %2536, %v2945_v23   ;;  %v415_v58 = vmul.f32 %v402_v50, %v377_v49  ;;  %v416_v59 = vmul.f32 %v406_v51, %v377_v49  ;;  %v417_v60 = vmul.f32 %v410_v52, %v377_v49  ;;  %v418_v61 = vmul.f32 %v414_v53, %v377_v49 }
  0xb5   : > { %v332_v62 = vpop.permute.xlu0 %331  ;;  %2537 = vset.pattern.permute.xlu1 %v2729_v9  ;;  %v455_v63 = vpop.permute.xlu1 %454 }
  0xb6   : > { %v371_v0 = vmul.f32 %v358_v54, %v332_v62  ;;  %v372_v1 = vmul.f32 %v362_v55, %v332_v62  ;;  %v373_v2 = vmul.f32 %v366_v56, %v332_v62  ;;  %v374_v3 = vmul.f32 %v370_v57, %v332_v62  ;;  %1280 = vperm.xlu1 %2537, %v2945_v23   ;;  %v3102_v62 = vld [vmem:[%s3099_s29] sm:$0xff] }
  0xb8   : > { %v419_v4 = vadd.f32 %v415_v58, %v371_v0  ;;  %v420_v5 = vadd.f32 %v416_v59, %v372_v1  ;;  %v421_v6 = vadd.f32 %v417_v60, %v373_v2  ;;  %v422_v7 = vadd.f32 %v418_v61, %v374_v3 }
  0xb9   : > { %v464_v12 = vpop.permute.xlu1 %463  ;;  %v469_v13 = vpop.permute.xlu0 %468 }
  0xba   : > { %v3046_v14 = vadd.f32 %v425_v48, %v419_v4  ;;  %v3048_v18 = vadd.f32 %v425_v48, %v420_v5  ;;  %v3050_v21 = vadd.f32 %v425_v48, %v421_v6  ;;  %v3052_v26 = vadd.f32 %v425_v48, %v422_v7  ;;  %2538 = vset.pattern.permute.xlu1 %v4106_v15 }
  0xbb   : > { %1320 = vperm.xlu1 %2538, %v2945_v23  }
  0xbc   : > { %4160 = vst [vmem:[#allocation16_spill] sm:$0xff] %v3046_v14  ;;  %4161 = vst [vmem:[#allocation17_spill] sm:$0xff] %v3048_v18  ;;  %v4097_v29 = vmax.f32 %v3046_v14, 0.0  ;;  %v4096_v30 = vmax.f32 %v3048_v18, 0.0  ;;  %v4095_v35 = vmax.f32 %v3050_v21, 0.0  ;;  %v4094_v40 = vmax.f32 %v3052_v26, 0.0 }
  0xbd   : > { %4162 = vst [vmem:[#allocation18_spill] sm:$0xff] %v3050_v21  ;;  %4163 = vst [vmem:[#allocation19_spill] sm:$0xff] %v3052_v26  ;;  %v4165_v18 = vmov 3  }
  0xbe   : > { %v3064_v42 = vadd.f32 %v455_v63, %v4097_v29  ;;  %v3068_v43 = vadd.f32 %v455_v63, %v4096_v30  ;;  %v3072_v44 = vadd.f32 %v455_v63, %v4095_v35  ;;  %v3076_v45 = vadd.f32 %v455_v63, %v4094_v40  ;;  %v497_v46 = vpop.permute.xlu1 %496  ;;  %v537_v47 = vpop.permute.xlu0 %536 }
  0xbf   : > { %2540 = vset.pattern.permute.xlu1 %v4103_v17 }
  0xc0   : > { %v474_v48 = vrot.slane %v3064_v42, %v3013_v36  ;;  %v478_v49 = vrot.slane %v3068_v43, %v3013_v36  ;;  %v482_v50 = vrot.slane %v3072_v44, %v3013_v36  ;;  %v486_v51 = vrot.slane %v3076_v45, %v3013_v36  ;;  %1400 = vperm.xlu1 %2540, %v2945_v23  }
  0xc1   : > { %v506_v52 = vrot.slane %v3064_v42, %v3001_v31  ;;  %v510_v53 = vrot.slane %v3068_v43, %v3001_v31  ;;  %v514_v54 = vrot.slane %v3072_v44, %v3001_v31  ;;  %v518_v55 = vrot.slane %v3076_v45, %v3001_v31 }
  0xc2   : > { %v501_v56 = vpop.permute.xlu1 %500  ;;  %v487_v58 = vmul.f32 %v474_v48, %v464_v12  ;;  %v488_v59 = vmul.f32 %v478_v49, %v464_v12  ;;  %v489_v63 = vmul.f32 %v482_v50, %v464_v12  ;;  %v490_v0 = vmul.f32 %v486_v51, %v464_v12 }
  0xc3   : > { %v3096_v57 = vpop.permute.xlu0 %580  ;;  %v519_v60 = vmul.f32 %v506_v52, %v497_v46  ;;  %v520_v61 = vmul.f32 %v510_v53, %v497_v46  ;;  %v521_v1 = vmul.f32 %v514_v54, %v497_v46  ;;  %v522_v2 = vmul.f32 %v518_v55, %v497_v46 }
  0xc4   : > { %2541 = vset.pattern.permute.xlu1 %v4101_v16  ;;  %v546_v3 = vrot.slane %v3064_v42, %v3016_v37  ;;  %v550_v4 = vrot.slane %v3068_v43, %v3016_v37  ;;  %v554_v5 = vrot.slane %v3072_v44, %v3016_v37  ;;  %v558_v6 = vrot.slane %v3076_v45, %v3016_v37  ;;  %v3119_v16 = vld [vmem:[%s3099_s29 + $0x8] sm:$0xff] }
  0xc5   : > { %1440 = vperm.xlu1 %2541, %v2945_v23   ;;  %v491_v46 = vmul.f32 %v474_v48, %v469_v13  ;;  %v492_v23 = vmul.f32 %v478_v49, %v469_v13  ;;  %v527_v27 = vadd.f32 %v519_v60, %v487_v58  ;;  %v528_v40 = vadd.f32 %v520_v61, %v488_v59 }
  0xc6   : > { %v493_v30 = vmul.f32 %v482_v50, %v469_v13  ;;  %v494_v29 = vmul.f32 %v486_v51, %v469_v13  ;;  %v529_v25 = vadd.f32 %v521_v1, %v489_v63  ;;  %v530_v20 = vadd.f32 %v522_v2, %v490_v0 }
  0xc7   : > { %v541_v7 = vpop.permute.xlu1 %540  ;;  %v559_v17 = vmul.f32 %v546_v3, %v537_v47  ;;  %v560_v19 = vmul.f32 %v550_v4, %v537_v47  ;;  %v561_v15 = vmul.f32 %v554_v5, %v537_v47  ;;  %v562_v12 = vmul.f32 %v558_v6, %v537_v47 }
  0xc8   : > { %v3115_v35 = vpop.permute.xlu0 %696  ;;  %v523_v48 = vmul.f32 %v506_v52, %v501_v56  ;;  %v524_v49 = vmul.f32 %v510_v53, %v501_v56  ;;  %v525_v58 = vmul.f32 %v514_v54, %v501_v56  ;;  %v526_v59 = vmul.f32 %v518_v55, %v501_v56 }
  0xc9   : > { %2543 = vset.pattern.permute.xlu1 %v2731_v11  ;;  %v567_v60 = vadd.f32 %v559_v17, %v527_v27  ;;  %v568_v61 = vadd.f32 %v560_v19, %v528_v40  ;;  %v569_v11 = vadd.f32 %v561_v15, %v529_v25  ;;  %v570_v63 = vadd.f32 %v562_v12, %v530_v20 }
  0xca   : > { %1575 = vperm.xlu1 %2543, %v2961_v24   ;;  %v563_v0 = vmul.f32 %v546_v3, %v541_v7  ;;  %v564_v1 = vmul.f32 %v550_v4, %v541_v7  ;;  %v3126_v47 = vrot.slane %v3064_v42, %v3004_v32  ;;  %v3130_v52 = vrot.slane %v3068_v43, %v3004_v32 }
  0xcb   : > { %v3134_v17 = vrot.slane %v3072_v44, %v3004_v32  ;;  %v3138_v19 = vrot.slane %v3076_v45, %v3004_v32  ;;  %v531_v20 = vadd.f32 %v523_v48, %v491_v46  ;;  %v532_v25 = vadd.f32 %v524_v49, %v492_v23 }
  0xcc   : > { %v577_v50 = vpop.permute.xlu1 %576  ;;  %v3143_v27 = vadd.f32 %v525_v58, %v493_v30  ;;  %v3145_v40 = vadd.f32 %v526_v59, %v494_v29  ;;  %v3152_v2 = vmul.f32 %v554_v5, %v541_v7  ;;  %v3154_v3 = vmul.f32 %v558_v6, %v541_v7 }
  0xcd   : > { %v3140_v15 = vpop.permute.xlu0 %660  ;;  %v599_v53 = vmul.f32 %v3126_v47, %v577_v50  ;;  %v600_v54 = vmul.f32 %v3130_v52, %v577_v50  ;;  %v601_v55 = vmul.f32 %v3134_v17, %v577_v50  ;;  %v602_v56 = vmul.f32 %v3138_v19, %v577_v50 }
  0xce   : > { %2544 = vset.pattern.permute.xlu1 %v2730_v10  ;;  %v3156_v10 = vadd.f32 %v563_v0, %v531_v20  ;;  %v3158_v30 = vadd.f32 %v564_v1, %v532_v25  ;;  %v3162_v4 = vrot.slane %v3064_v42, %v3022_v39  ;;  %v3166_v12 = vrot.slane %v3068_v43, %v3022_v39 }
  0xcf   : > { %1607 = vperm.xlu1 %2544, %v2961_v24   ;;  %v3170_v46 = vrot.slane %v3072_v44, %v3022_v39  ;;  %v3174_v5 = vrot.slane %v3076_v45, %v3022_v39  ;;  %v607_v7 = vadd.f32 %v599_v53, %v567_v60  ;;  %v608_v23 = vadd.f32 %v600_v54, %v568_v61 }
  0xd0   : > { %v609_v48 = vadd.f32 %v601_v55, %v569_v11  ;;  %v610_v49 = vadd.f32 %v602_v56, %v570_v63  ;;  %v3181_v58 = vrot.slane %v3064_v42, %v3019_v38  ;;  %v3185_v59 = vrot.slane %v3068_v43, %v3019_v38 }
  0xd1   : > { %v617_v29 = vpop.permute.xlu1 %616  ;;  %v3189_v50 = vrot.slane %v3072_v44, %v3019_v38  ;;  %v3193_v60 = vrot.slane %v3076_v45, %v3019_v38  ;;  %v3202_v61 = vrot.slane %v3068_v43, %v3007_v33  ;;  %v3206_v11 = vrot.slane %v3072_v44, %v3007_v33 }
  0xd2   : > { %v3176_v6 = vpop.permute.xlu0 %982  ;;  %v3210_v63 = vrot.slane %v3076_v45, %v3007_v33  ;;  %v639_v0 = vmul.f32 %v3181_v58, %v617_v29  ;;  %v640_v1 = vmul.f32 %v3185_v59, %v617_v29  ;;  %v720_v14 = vmul.f32 %v3166_v12, %v3115_v35 }
  0xd3   : > { %4164 = vst [vmem:[#allocation20_spill] sm:$0xff] %v3176_v6  ;;  %2546 = vset.pattern.permute.xlu1 %v2729_v9  ;;  %v3198_v9 = vrot.slane %v3064_v42, %v3007_v33  ;;  %v641_v20 = vmul.f32 %v3189_v50, %v617_v29  ;;  %v642_v25 = vmul.f32 %v3193_v60, %v617_v29 }
  0xd4   : > { %1647 = vperm.xlu1 %2546, %v2961_v24   ;;  %v647_v41 = vadd.f32 %v639_v0, %v607_v7  ;;  %v648_v28 = vadd.f32 %v640_v1, %v608_v23  ;;  %v719_v29 = vmul.f32 %v3162_v4, %v3115_v35  ;;  %v721_v6 = vmul.f32 %v3170_v46, %v3115_v35 }
  0xd5   : > { %v649_v26 = vadd.f32 %v641_v20, %v609_v48  ;;  %v650_v21 = vadd.f32 %v642_v25, %v610_v49  ;;  %v3234_v1 = vrot.slane %v3064_v42, %v3010_v34  ;;  %v3238_v20 = vrot.slane %v3068_v43, %v3010_v34 }
  0xd6   : > { %v657_v53 = vpop.permute.xlu1 %656  ;;  %v3242_v25 = vrot.slane %v3072_v44, %v3010_v34  ;;  %v4166_v44 = vmov 4  }
  0xd7   : > { %v679_v54 = vmul.f32 %v3198_v9, %v657_v53  ;;  %v680_v55 = vmul.f32 %v3202_v61, %v657_v53  ;;  %v681_v56 = vmul.f32 %v3206_v11, %v657_v53  ;;  %v682_v51 = vmul.f32 %v3210_v63, %v657_v53  ;;  %v3220_v13 = vpop.permute.xlu0 %1102 }
  0xd8   : > { %2547 = vset.pattern.permute.xlu1 %v4165_v18  ;;  %v722_v53 = vmul.f32 %v3174_v5, %v3115_v35  ;;  %v3246_v35 = vrot.slane %v3076_v45, %v3010_v34  ;;  %v603_v45 = vmul.f32 %v3126_v47, %v3096_v57  ;;  %v574_v47 = vadd.f32 %v3154_v3, %v3145_v40 }
  0xd9   : > { %946 = vperm.xlu1 %2547, %v2936_v22   ;;  %v687_v7 = vadd.f32 %v679_v54, %v647_v41  ;;  %v688_v23 = vadd.f32 %v680_v55, %v648_v28  ;;  %v689_v48 = vadd.f32 %v681_v56, %v649_v26  ;;  %v690_v49 = vadd.f32 %v682_v51, %v650_v21 }
  0xda   : > { %v573_v56 = vadd.f32 %v3152_v2, %v3143_v27  ;;  %v4167_v27 = vunpack.c.l.bf16 %v3102_v62 }
  0xdb   : > { %v737_v0 = vpop.permute.xlu1 %736  ;;  %v727_v28 = vadd.f32 %v719_v29, %v687_v7  ;;  %v728_v26 = vadd.f32 %v720_v14, %v688_v23  ;;  %v729_v21 = vadd.f32 %v721_v6, %v689_v48  ;;  %v730_v41 = vadd.f32 %v722_v53, %v690_v49 }
  0xdc   : > { %v3248_v51 = vpop.permute.xlu0 %829  ;;  %v759_v42 = vmul.f32 %v3234_v1, %v737_v0  ;;  %v760_v54 = vmul.f32 %v3238_v20, %v737_v0  ;;  %v761_v43 = vmul.f32 %v3242_v25, %v737_v0  ;;  %v762_v55 = vmul.f32 %v3246_v35, %v737_v0 }
  0xdd   : > { %2549 = vset.pattern.permute.xlu1 %v4166_v44  ;;  %v604_v14 = vmul.f32 %v3130_v52, %v3096_v57  ;;  %v605_v6 = vmul.f32 %v3134_v17, %v3096_v57  ;;  %v606_v48 = vmul.f32 %v3138_v19, %v3096_v57  ;;  %v611_v52 = vadd.f32 %v603_v45, %v3156_v10 }
  0xde   : > { %986 = vperm.xlu1 %2549, %v2936_v22   ;;  %v767_v29 = vadd.f32 %v759_v42, %v727_v28  ;;  %v768_v53 = vadd.f32 %v760_v54, %v728_v26  ;;  %v769_v7 = vadd.f32 %v761_v43, %v729_v21  ;;  %v770_v23 = vadd.f32 %v762_v55, %v730_v41 }
  0xdf   : > { %v612_v17 = vadd.f32 %v604_v14, %v3158_v30  ;;  %v4168_v28 = vunpack.c.h.bf16 %v3102_v62  ;;  %v4169_v21 = vunpack.c.l.bf16 %v3119_v16  ;;  %v4170_v57 = vunpack.c.h.bf16 %v3119_v16 }
  0xe0   : > { %v621_v49 = vpop.permute.xlu1 %620  ;;  %v3270_v0 = vpop.permute.xlu0 %1203  ;;  %v787_v2 = vadd.f32 %v4167_v27, %v767_v29  ;;  %v613_v43 = vadd.f32 %v605_v6, %v573_v56  ;;  %v614_v44 = vadd.f32 %v606_v48, %v574_v47  ;;  %v685_v6 = vmul.f32 %v3206_v11, %v3140_v15 }
  0xe1   : > { %v788_v26 = vadd.f32 %v4168_v28, %v768_v53  ;;  %v789_v41 = vadd.f32 %v4169_v21, %v769_v7  ;;  %v790_v19 = vadd.f32 %v4170_v57, %v770_v23  ;;  %v643_v40 = vmul.f32 %v3181_v58, %v621_v49 }
  0xe2   : > { %v644_v3 = vmul.f32 %v3185_v59, %v621_v49  ;;  %v645_v10 = vmul.f32 %v3189_v50, %v621_v49  ;;  %v646_v30 = vmul.f32 %v3193_v60, %v621_v49  ;;  %1727 = vperm.xlu1 %2549, %v2961_v24   ;;  %v2373_v42 = vmul.f32 -1.442695, %v787_v2 }
  0xe3   : > { %v2374_v54 = vmul.f32 -1.442695, %v788_v26  ;;  %v2375_v62 = vmul.f32 -1.442695, %v789_v41  ;;  %v2376_v55 = vmul.f32 -1.442695, %v790_v19  ;;  %v651_v45 = vadd.f32 %v643_v40, %v611_v52 }
  0xe4   : > { %v652_v16 = vadd.f32 %v644_v3, %v612_v17  ;;  %v683_v58 = vmul.f32 %v3198_v9, %v3140_v15  ;;  %2568 = vpow2.f32 %v2373_v42  ;;  %v653_v59 = vadd.f32 %v645_v10, %v613_v43  ;;  %v777_v9 = vld [vmem:[%s3099_s29 + $0x10] sm:$0xff] }
  0xe5   : > { %v701_v14 = vpop.permute.xlu1 %700  ;;  %v3287_v50 = vpop.permute.xlu0 %1316  ;;  %v684_v60 = vmul.f32 %v3202_v61, %v3140_v15  ;;  %2570 = vpow2.f32 %v2374_v54  ;;  %v654_v29 = vadd.f32 %v646_v30, %v614_v44  ;;  %v4171_v53 = vmov 5  }
  0xe6   : > { %2551 = vset.pattern.permute.xlu1 %v4171_v53  ;;  %2572 = vpow2.f32 %v2375_v62  ;;  %v691_v56 = vadd.f32 %v683_v58, %v651_v45  ;;  %v723_v7 = vmul.f32 %v3162_v4, %v701_v14  ;;  %v686_v23 = vmul.f32 %v3210_v63, %v3140_v15 }
  0xe7   : > { %1767 = vperm.xlu1 %2551, %v2961_v24   ;;  %2574 = vpow2.f32 %v2376_v55  ;;  %v692_v48 = vadd.f32 %v684_v60, %v652_v16  ;;  %v724_v61 = vmul.f32 %v3166_v12, %v701_v14  ;;  %v693_v47 = vadd.f32 %v685_v6, %v653_v59 }
  0xe8   : > { %v725_v49 = vmul.f32 %v3170_v46, %v701_v14  ;;  %v694_v52 = vadd.f32 %v686_v23, %v654_v29  ;;  %v726_v11 = vmul.f32 %v3174_v5, %v701_v14  ;;  %v783_v27 = vunpack.c.l.bf16 %v777_v9  ;;  %v778_v46 = vld [vmem:[%s3099_s29 + $0x18] sm:$0xff] }
  0xe9   : > { %v731_v4 = vadd.f32 %v723_v7, %v691_v56  ;;  %v4172_v63 = vmov 6   ;;  %v732_v12 = vadd.f32 %v724_v61, %v692_v48  ;;  %v784_v40 = vunpack.c.h.bf16 %v777_v9 }
  0xea   : > { %v741_v17 = vpop.permute.xlu1 %740  ;;  %v3306_v26 = vpop.permute.xlu0 %1436  ;;  %v733_v5 = vadd.f32 %v725_v49, %v693_v47  ;;  %v734_v57 = vadd.f32 %v726_v11, %v694_v52  ;;  %v786_v62 = vunpack.c.h.bf16 %v778_v46  ;;  %v4173_v43 = vmov 7  }
  0xeb   : > { %v763_v2 = vmul.f32 %v3234_v1, %v741_v17  ;;  %v764_v28 = vmul.f32 %v3238_v20, %v741_v17  ;;  %v765_v15 = vmul.f32 %v3242_v25, %v741_v17  ;;  %2552 = vset.pattern.permute.xlu1 %v4172_v63  ;;  %v766_v21 = vmul.f32 %v3246_v35, %v741_v17 }
  0xec   : > { %1066 = vperm.xlu1 %2552, %v2936_v22   ;;  %v785_v20 = vunpack.c.l.bf16 %v778_v46 }
  0xed   : > { %v771_v41 = vadd.f32 %v763_v2, %v731_v4  ;;  %v772_v19 = vadd.f32 %v764_v28, %v732_v12  ;;  %v773_v3 = vadd.f32 %v765_v15, %v733_v5  ;;  %v774_v54 = vadd.f32 %v766_v21, %v734_v57 }
  0xee   : > { %v2569_v1 = vpop.eup %2568 }
  0xef   : > { %v791_v10 = vadd.f32 %v783_v27, %v771_v41  ;;  %v3311_v25 = vpop.permute.xlu1 %834  ;;  %v2571_v30 = vpop.eup %2570  ;;  %v807_v42 = vadd.f32 1.0, %v2569_v1  ;;  %v792_v58 = vadd.f32 %v784_v40, %v772_v19  ;;  %v793_v14 = vadd.f32 %v785_v20, %v773_v3 }
  0xf0   : > { %2554 = vset.pattern.permute.xlu1 %v4173_v43  ;;  %v2573_v35 = vpop.eup %2572  ;;  %v808_v55 = vadd.f32 1.0, %v2571_v30  ;;  %v3315_v44 = vpop.permute.xlu0 %866  ;;  %v794_v60 = vadd.f32 %v786_v62, %v774_v54 }
  0xf1   : > { %2576 = vtanh.f32 %v791_v10  ;;  %1106 = vperm.xlu1 %2554, %v2936_v22   ;;  %v2575_v45 = vpop.eup %2574  ;;  %v809_v16 = vadd.f32 1.0, %v2573_v35  ;;  %v4174_v22 = vmov 8  }
  0xf2   : > { %2578 = vrcp.f32 %v807_v42  ;;  %v810_v59 = vadd.f32 1.0, %v2575_v45 }
  0xf3   : > { %2580 = vrcp.f32 %v808_v55 }
  0xf4   : > { %2582 = vrcp.f32 %v809_v16  ;;  %v3317_v29 = vpop.permute.xlu1 %862  ;;  %v3320_v6 = vpop.permute.xlu0 %1240 }
  0xf5   : > { %2584 = vrcp.f32 %v810_v59  ;;  %1847 = vperm.xlu1 %2554, %v2961_v24  }
  0xf6   : > { %2586 = vtanh.f32 %v792_v58 }
  0xf7   : > { %2588 = vtanh.f32 %v793_v14 }
  0xf8   : > { %2590 = vtanh.f32 %v794_v60  ;;  %v3326_v61 = vpop.permute.xlu0 %1360 }
  0xf9   : > { %2556 = vset.pattern.permute.xlu1 %v4174_v22  ;;  %v3323_v56 = vpop.permute.xlu1 %902 }
  0xfa   : > { %1887 = vperm.xlu1 %2556, %v2961_v24  }
  0xfb   : > { %v2577_v7 = vpop.eup %2576 }
  0xfc   : > { %v2579_v9 = vpop.eup %2578 }
  0xfd   : > { %v2581_v23 = vpop.eup %2580  ;;  %v823_v48 = vmul.f32 %v2579_v9, %v2577_v7  ;;  %v3370_v54 = vpop.permute.xlu0 %1480 }
  0xfe   : > { %v2583_v47 = vpop.eup %2582  ;;  %2557 = vset.pattern.permute.xlu1 %v4165_v18  ;;  %v3329_v49 = vpop.permute.xlu1 %942  ;;  %4180 = vst [vmem:[#allocation26_spill] sm:$0xff] %v3370_v54 }
  0xff   : > { %v2585_v52 = vpop.eup %2584  ;;  %v840_v11 = vrot.slane %v823_v48, %v3013_v36  ;;  %v872_v17 = vrot.slane %v823_v48, %v3001_v31  ;;  %v3334_v27 = vrot.slane %v823_v48, %v3016_v37  ;;  %v3337_v24 = vrot.slane %v823_v48, %v3004_v32  ;;  %1931 = vperm.xlu1 %2557, %v2878_v8  }
 0x100   : > { %v2587_v4 = vpop.eup %2586  ;;  %v3341_v2 = vrot.slane %v823_v48, %v3019_v38  ;;  %v3344_v18 = vrot.slane %v823_v48, %v3007_v33  ;;  %v3347_v28 = vrot.slane %v823_v48, %v3022_v39  ;;  %v3350_v15 = vrot.slane %v823_v48, %v3010_v34 }
 0x101   : > { %4175 = vst [vmem:[#allocation21_spill] sm:$0xff] %v3337_v24  ;;  %v2589_v12 = vpop.eup %2588  ;;  %v3352_v21 = vmul.f32 %v2587_v4, %v2581_v23  ;;  %v857_v46 = vmul.f32 %v840_v11, %v3311_v25  ;;  %v889_v5 = vmul.f32 %v872_v17, %v3315_v44  ;;  %v853_v41 = vmul.f32 %v840_v11, %v3248_v51 }
 0x102   : > { %4176 = vst [vmem:[#allocation22_spill] sm:$0xff] %v3341_v2  ;;  %4177 = vst [vmem:[#allocation23_spill] sm:$0xff] %v3344_v18  ;;  %v2591_v57 = vpop.eup %2590  ;;  %v3357_v19 = vmul.f32 %v2589_v12, %v2583_v47  ;;  %v885_v40 = vmul.f32 %v872_v17, %v3317_v29  ;;  %v925_v1 = vmul.f32 %v3334_v27, %v3323_v56 }
 0x103   : > { %4178 = vst [vmem:[#allocation24_spill] sm:$0xff] %v3347_v28  ;;  %4179 = vst [vmem:[#allocation25_spill] sm:$0xff] %v3350_v15  ;;  %v965_v3 = vmul.f32 %v3337_v24, %v3329_v49  ;;  %v3364_v20 = vmul.f32 %v2591_v57, %v2585_v52  ;;  %v844_v10 = vrot.slane %v3352_v21, %v3013_v36  ;;  %2559 = vset.pattern.permute.xlu1 %v4171_v53  ;;  %v3373_v62 = vpop.permute.xlu1 %1022 }
 0x104   : > { %v876_v30 = vrot.slane %v3352_v21, %v3001_v31  ;;  %v897_v42 = vadd.f32 %v889_v5, %v857_v46  ;;  %v848_v43 = vrot.slane %v3357_v19, %v3013_v36  ;;  %v880_v35 = vrot.slane %v3357_v19, %v3001_v31  ;;  %1983 = vperm.xlu1 %2559, %v2878_v8  }
 0x105   : > { %v893_v55 = vadd.f32 %v885_v40, %v853_v41  ;;  %v916_v45 = vrot.slane %v3352_v21, %v3016_v37  ;;  %v852_v16 = vrot.slane %v3364_v20, %v3013_v36  ;;  %v858_v58 = vmul.f32 %v844_v10, %v3311_v25  ;;  %v907_v41 = vpop.permute.xlu0 %906 }
 0x106   : > { %v884_v53 = vrot.slane %v3364_v20, %v3001_v31  ;;  %v890_v59 = vmul.f32 %v876_v30, %v3315_v44  ;;  %v859_v14 = vmul.f32 %v848_v43, %v3311_v25  ;;  %v891_v60 = vmul.f32 %v880_v35, %v3315_v44 }
 0x107   : > { %v854_v7 = vmul.f32 %v844_v10, %v3248_v51  ;;  %v855_v9 = vmul.f32 %v848_v43, %v3248_v51  ;;  %v860_v23 = vmul.f32 %v852_v16, %v3311_v25  ;;  %v856_v52 = vmul.f32 %v852_v16, %v3248_v51 }
 0x108   : > { %v892_v48 = vmul.f32 %v884_v53, %v3315_v44  ;;  %v898_v47 = vadd.f32 %v890_v59, %v858_v58  ;;  %v899_v11 = vadd.f32 %v891_v60, %v859_v14  ;;  %v886_v17 = vmul.f32 %v876_v30, %v3317_v29  ;;  %2560 = vset.pattern.permute.xlu1 %v4172_v63  ;;  %v3399_v46 = vpop.permute.xlu1 %1062 }
 0x109   : > { %v887_v4 = vmul.f32 %v880_v35, %v3317_v29  ;;  %v888_v12 = vmul.f32 %v884_v53, %v3317_v29  ;;  %v920_v25 = vrot.slane %v3357_v19, %v3016_v37  ;;  %v924_v44 = vrot.slane %v3364_v20, %v3016_v37  ;;  %2011 = vperm.xlu1 %2560, %v2878_v8  }
 0x10a   : > { %v900_v5 = vadd.f32 %v892_v48, %v860_v23  ;;  %v926_v51 = vmul.f32 %v916_v45, %v3323_v56  ;;  %v894_v57 = vadd.f32 %v886_v17, %v854_v7  ;;  %v933_v29 = vadd.f32 %v925_v1, %v893_v55 }
 0x10b   : > { %v895_v40 = vadd.f32 %v887_v4, %v855_v9  ;;  %v896_v10 = vadd.f32 %v888_v12, %v856_v52  ;;  %v927_v63 = vmul.f32 %v920_v25, %v3323_v56  ;;  %v928_v30 = vmul.f32 %v924_v44, %v3323_v56 }
 0x10c   : > { %v3411_v43 = vrot.slane %v3352_v21, %v3004_v32  ;;  %v3415_v35 = vrot.slane %v3357_v19, %v3004_v32  ;;  %v934_v16 = vadd.f32 %v926_v51, %v894_v57  ;;  %v3419_v8 = vrot.slane %v3364_v20, %v3004_v32 }
 0x10d   : > { %v973_v58 = vadd.f32 %v965_v3, %v933_v29  ;;  %v929_v1 = vmul.f32 %v3334_v27, %v907_v41  ;;  %v935_v55 = vadd.f32 %v927_v63, %v895_v40  ;;  %v936_v53 = vadd.f32 %v928_v30, %v896_v10  ;;  %2562 = vset.pattern.permute.xlu1 %v4174_v22  ;;  %v3427_v14 = vpop.permute.xlu1 %1142  ;;  %v2616_v27 = vld [vmem:[%s4091_s4] sm:$0xff] }
 0x10e   : > { %4181 = vst [vmem:[#allocation27_spill] sm:$0xff] %v3411_v43  ;;  %4182 = vst [vmem:[#allocation28_spill] sm:$0xff] %v3415_v35  ;;  %v966_v56 = vmul.f32 %v3411_v43, %v3329_v49  ;;  %v967_v59 = vmul.f32 %v3415_v35, %v3329_v49  ;;  %v968_v60 = vmul.f32 %v3419_v8, %v3329_v49  ;;  %2067 = vperm.xlu1 %2562, %v2616_v27   ;;  %v2740_v57 = vmov 9  }
 0x10f   : > { %4183 = vst [vmem:[#allocation29_spill] sm:$0xff] %v3419_v8  ;;  %v930_v7 = vmul.f32 %v916_v45, %v907_v41  ;;  %v931_v9 = vmul.f32 %v920_v25, %v907_v41  ;;  %v932_v3 = vmul.f32 %v924_v44, %v907_v41  ;;  %v3434_v52 = vadd.f32 %v929_v1, %v897_v42  ;;  %v4191_v42 = vld [vmem:[#allocation20_spill] sm:$0xff] }
 0x110   : > { %v974_v23 = vadd.f32 %v966_v56, %v934_v16  ;;  %v975_v48 = vadd.f32 %v967_v59, %v935_v55  ;;  %v3438_v22 = vrot.slane %v3352_v21, %v3019_v38  ;;  %v976_v17 = vadd.f32 %v968_v60, %v936_v53 }
 0x111   : > { %4184 = vst [vmem:[#allocation30_spill] sm:$0xff] %v3434_v52  ;;  %v3440_v4 = vadd.f32 %v930_v7, %v898_v47  ;;  %v3442_v49 = vadd.f32 %v931_v9, %v899_v11  ;;  %v3444_v45 = vadd.f32 %v932_v3, %v900_v5  ;;  %v3448_v12 = vrot.slane %v3357_v19, %v3019_v38 }
 0x112   : > { %4185 = vst [vmem:[#allocation31_spill] sm:$0xff] %v3438_v22  ;;  %v3452_v25 = vrot.slane %v3364_v20, %v3019_v38  ;;  %v1005_v44 = vmul.f32 %v3341_v2, %v4191_v42  ;;  %v1006_v51 = vmul.f32 %v3438_v22, %v4191_v42  ;;  %v3460_v47 = vrot.slane %v3352_v21, %v3007_v33  ;;  %v3472_v40 = vpop.permute.xlu1 %1194 }
 0x113   : > { %4186 = vst [vmem:[#allocation32_spill] sm:$0xff] %v3440_v4  ;;  %4187 = vst [vmem:[#allocation33_spill] sm:$0xff] %v3442_v49  ;;  %v3464_v11 = vrot.slane %v3357_v19, %v3007_v33  ;;  %v3468_v5 = vrot.slane %v3364_v20, %v3007_v33  ;;  %v1045_v41 = vmul.f32 %v3344_v18, %v3373_v62  ;;  %2563 = vset.pattern.permute.xlu1 %v2740_v57 }
 0x114   : > { %4188 = vst [vmem:[#allocation34_spill] sm:$0xff] %v3444_v45  ;;  %4189 = vst [vmem:[#allocation35_spill] sm:$0xff] %v3448_v12  ;;  %v1007_v10 = vmul.f32 %v3448_v12, %v4191_v42  ;;  %v1008_v29 = vmul.f32 %v3452_v25, %v4191_v42  ;;  %v1013_v63 = vadd.f32 %v1005_v44, %v973_v58  ;;  %2095 = vperm.xlu1 %2563, %v2616_v27  }
 0x115   : > { %4190 = vst [vmem:[#allocation36_spill] sm:$0xff] %v3452_v25  ;;  %4192 = vst [vmem:[#allocation20_spill] sm:$0xff] %v3460_v47  ;;  %v1014_v30 = vadd.f32 %v1006_v51, %v974_v23  ;;  %v1046_v16 = vmul.f32 %v3460_v47, %v3373_v62  ;;  %v1047_v1 = vmul.f32 %v3464_v11, %v3373_v62 }
 0x116   : > { %4193 = vst [vmem:[#allocation37_spill] sm:$0xff] %v3464_v11  ;;  %4194 = vst [vmem:[#allocation38_spill] sm:$0xff] %v3468_v5  ;;  %v1048_v55 = vmul.f32 %v3468_v5, %v3373_v62  ;;  %v3486_v53 = vrot.slane %v3352_v21, %v3022_v39  ;;  %v1015_v56 = vadd.f32 %v1007_v10, %v975_v48 }
 0x117   : > { %v1016_v59 = vadd.f32 %v1008_v29, %v976_v17  ;;  %v1053_v60 = vadd.f32 %v1045_v41, %v1013_v63  ;;  %v3490_v58 = vrot.slane %v3357_v19, %v3022_v39  ;;  %v1054_v7 = vadd.f32 %v1046_v16, %v1014_v30  ;;  %v1237_v44 = vpop.permute.xlu1 %1236 }
 0x118   : > { %4195 = vst [vmem:[#allocation39_spill] sm:$0xff] %v3486_v53  ;;  %v3494_v9 = vrot.slane %v3364_v20, %v3022_v39  ;;  %v1085_v3 = vmul.f32 %v3347_v28, %v3399_v46  ;;  %v1086_v62 = vmul.f32 %v3486_v53, %v3399_v46  ;;  %v1055_v23 = vadd.f32 %v1047_v1, %v1015_v56 }
 0x119   : > { %4196 = vst [vmem:[#allocation40_spill] sm:$0xff] %v3490_v58  ;;  %v1056_v42 = vadd.f32 %v1048_v55, %v1016_v59  ;;  %v1087_v48 = vmul.f32 %v3490_v58, %v3399_v46  ;;  %v2741_v17 = vmov 11   ;;  %v3506_v29 = vrot.slane %v3352_v21, %v3010_v34 }
 0x11a   : > { %4197 = vst [vmem:[#allocation41_spill] sm:$0xff] %v3494_v9  ;;  %2565 = vset.pattern.permute.xlu1 %v2741_v17  ;;  %v1088_v51 = vmul.f32 %v3494_v9, %v3399_v46  ;;  %v1093_v41 = vadd.f32 %v1085_v3, %v1053_v60  ;;  %v1094_v57 = vadd.f32 %v1086_v62, %v1054_v7  ;;  %v2742_v59 = vmov 12  }
 0x11b   : > { %2151 = vperm.xlu1 %2565, %v2616_v27   ;;  %v1095_v10 = vadd.f32 %v1087_v48, %v1055_v23  ;;  %4198 = vst [vmem:[#allocation42_spill] sm:$0xff] %v3506_v29  ;;  %v3510_v30 = vrot.slane %v3357_v19, %v3010_v34  ;;  %v3514_v16 = vrot.slane %v3364_v20, %v3010_v34  ;;  %v4201_v48 = vld [vmem:[#allocation16_spill] sm:$0xff] }
 0x11c   : > { %v1096_v63 = vadd.f32 %v1088_v51, %v1056_v42  ;;  %v1125_v46 = vmul.f32 %v3350_v15, %v3220_v13  ;;  %v1126_v1 = vmul.f32 %v3506_v29, %v3220_v13  ;;  %v1277_v19 = vpop.permute.xlu1 %1276  ;;  %v4202_v17 = vmax.f32 %v4201_v48, 0.0  ;;  %v4203_v51 = vld [vmem:[#allocation17_spill] sm:$0xff] }
 0x11d   : > { %4199 = vst [vmem:[#allocation43_spill] sm:$0xff] %v3510_v30  ;;  %4200 = vst [vmem:[#allocation44_spill] sm:$0xff] %v3514_v16  ;;  %v1127_v55 = vmul.f32 %v3510_v30, %v3220_v13  ;;  %v1128_v21 = vmul.f32 %v3514_v16, %v3220_v13 }
 0x11e   : > { %v1133_v56 = vadd.f32 %v1125_v46, %v1093_v41  ;;  %v1134_v60 = vadd.f32 %v1126_v1, %v1094_v57  ;;  %v4204_v41 = vmax.f32 %v4203_v51, 0.0  ;;  %v4205_v57 = vld [vmem:[#allocation18_spill] sm:$0xff] }
 0x11f   : > { %2566 = vset.pattern.permute.xlu1 %v2742_v59  ;;  %v1135_v20 = vadd.f32 %v1127_v55, %v1095_v10  ;;  %v1136_v7 = vadd.f32 %v1128_v21, %v1096_v63  ;;  %v4207_v63 = vld [vmem:[#allocation19_spill] sm:$0xff] }
 0x120   : > { %2163 = vperm.xlu1 %2566, %v2616_v27   ;;  %v1149_v3 = vadd.f32 %v3427_v14, %v1133_v56  ;;  %v1150_v62 = vadd.f32 %v3427_v14, %v1134_v60  ;;  %v4206_v27 = vmax.f32 %v4205_v57, 0.0  ;;  %v4208_v1 = vmax.f32 %v4207_v63, 0.0  ;;  %v3539_v56 = vld [vmem:[%s3099_s29 + $0x20] sm:$0xff] }
 0x121   : > { %v1151_v23 = vadd.f32 %v3427_v14, %v1135_v20  ;;  %v1152_v42 = vadd.f32 %v3427_v14, %v1136_v7  ;;  %v3532_v59 = vpop.permute.xlu1 %1356  ;;  %v1521_v8 = vunpack.c.h.bf16 %v3539_v56 }
 0x122   : > { %v1157_v13 = vadd.f32 %v1149_v3, %v4202_v17  ;;  %v1158_v46 = vadd.f32 %v1150_v62, %v4204_v41 }
 0x123   : > { %v1159_v10 = vadd.f32 %v1151_v23, %v4206_v27  ;;  %v1160_v55 = vadd.f32 %v1152_v42, %v4208_v1 }
 0x124   : > { %v1161_v21 = vmul.f32 0.70710677, %v1157_v13  ;;  %v1162_v60 = vmul.f32 0.70710677, %v1158_v46 }
 0x125   : > { %v1163_v20 = vmul.f32 0.70710677, %v1159_v10  ;;  %v1164_v14 = vmul.f32 0.70710677, %v1160_v55 }
 0x126   : > { %v3542_v7 = vadd.f32 %v3472_v40, %v1161_v21  ;;  %v3545_v3 = vadd.f32 %v3472_v40, %v1162_v60  ;;  %v3562_v13 = vpop.permute.xlu1 %1396 }
 0x127   : > { %v3549_v48 = vadd.f32 %v3472_v40, %v1163_v20  ;;  %v3552_v23 = vadd.f32 %v3472_v40, %v1164_v14 }
 0x128   : > { %v3556_v42 = vrot.slane %v3542_v7, %v3013_v36  ;;  %v3560_v17 = vrot.slane %v3542_v7, %v3001_v31  ;;  %v3566_v51 = vrot.slane %v3545_v3, %v3013_v36  ;;  %v3570_v41 = vrot.slane %v3545_v3, %v3001_v31 }
 0x129   : > { %v3574_v40 = vrot.slane %v3542_v7, %v3016_v37  ;;  %v3578_v46 = vrot.slane %v3545_v3, %v3016_v37  ;;  %v3582_v57 = vrot.slane %v3549_v48, %v3013_v36  ;;  %v3586_v27 = vrot.slane %v3552_v23, %v3013_v36  ;;  %v3660_v36 = vld [vmem:[%s3099_s29 + $0x30] sm:$0xff] }
 0x12a   : > { %v1227_v10 = vmul.f32 %v3556_v42, %v3270_v0  ;;  %v3592_v63 = vrot.slane %v3549_v48, %v3001_v31  ;;  %v1228_v1 = vmul.f32 %v3566_v51, %v3270_v0  ;;  %v3598_v55 = vrot.slane %v3552_v23, %v3001_v31 }
 0x12b   : > { %v1259_v21 = vmul.f32 %v3560_v17, %v1237_v44  ;;  %v1260_v60 = vmul.f32 %v3570_v41, %v1237_v44  ;;  %v1229_v20 = vmul.f32 %v3582_v57, %v3270_v0  ;;  %v1230_v14 = vmul.f32 %v3586_v27, %v3270_v0  ;;  %v3616_v58 = vpop.permute.xlu1 %1476 }
 0x12c   : > { %v1261_v62 = vmul.f32 %v3592_v63, %v1237_v44  ;;  %v3609_v16 = vrot.slane %v3549_v48, %v3016_v37  ;;  %v1262_v30 = vmul.f32 %v3598_v55, %v1237_v44  ;;  %v3614_v9 = vrot.slane %v3552_v23, %v3016_v37 }
 0x12d   : > { %v1267_v29 = vadd.f32 %v1259_v21, %v1227_v10  ;;  %v1268_v15 = vadd.f32 %v1260_v60, %v1228_v1  ;;  %v1299_v28 = vmul.f32 %v3574_v40, %v1277_v19  ;;  %v1300_v0 = vmul.f32 %v3578_v46, %v1277_v19 }
 0x12e   : > { %v1269_v53 = vadd.f32 %v1261_v62, %v1229_v20  ;;  %v1301_v45 = vmul.f32 %v3609_v16, %v1277_v19  ;;  %v1270_v49 = vadd.f32 %v1262_v30, %v1230_v14  ;;  %v1302_v31 = vmul.f32 %v3614_v9, %v1277_v19 }
 0x12f   : > { %v3624_v44 = vrot.slane %v3542_v7, %v3004_v32  ;;  %v3628_v10 = vrot.slane %v3545_v3, %v3004_v32  ;;  %v1307_v1 = vadd.f32 %v1299_v28, %v1267_v29  ;;  %v1308_v62 = vadd.f32 %v1300_v0, %v1268_v15 }
 0x130   : > { %v1309_v21 = vadd.f32 %v1301_v45, %v1269_v53  ;;  %v3632_v60 = vrot.slane %v3549_v48, %v3004_v32  ;;  %v1310_v30 = vadd.f32 %v1302_v31, %v1270_v49  ;;  %v3636_v19 = vrot.slane %v3552_v23, %v3004_v32  ;;  %v3651_v49 = vld [vmem:[%s3099_s29 + $0x28] sm:$0xff]  ;;  %v3653_v53 = vpop.permute.xlu1 %1208 }
 0x131   : > { %v1339_v20 = vmul.f32 %v3624_v44, %v3287_v50  ;;  %v1340_v14 = vmul.f32 %v3628_v10, %v3287_v50  ;;  %v1366_v15 = vrot.slane %v3542_v7, %v3019_v38  ;;  %v1370_v45 = vrot.slane %v3545_v3, %v3019_v38 }
 0x132   : > { %v1341_v28 = vmul.f32 %v3632_v60, %v3287_v50  ;;  %v1374_v31 = vrot.slane %v3549_v48, %v3019_v38  ;;  %v1342_v29 = vmul.f32 %v3636_v19, %v3287_v50  ;;  %v1378_v37 = vrot.slane %v3552_v23, %v3019_v38 }
 0x133   : > { %v1347_v0 = vadd.f32 %v1339_v20, %v1307_v1  ;;  %v1348_v32 = vadd.f32 %v1340_v14, %v1308_v62  ;;  %v1379_v12 = vmul.f32 %v1366_v15, %v3532_v59  ;;  %v1380_v22 = vmul.f32 %v1370_v45, %v3532_v59 }
 0x134   : > { %v1349_v25 = vadd.f32 %v1341_v28, %v1309_v21  ;;  %v1381_v2 = vmul.f32 %v1374_v31, %v3532_v59  ;;  %v1350_v4 = vadd.f32 %v1342_v29, %v1310_v30  ;;  %v1382_v52 = vmul.f32 %v1378_v37, %v3532_v59 }
 0x135   : > { %v1522_v50 = vunpack.c.l.bf16 %v3651_v49  ;;  %v1387_v1 = vadd.f32 %v1379_v12, %v1347_v0  ;;  %v1388_v62 = vadd.f32 %v1380_v22, %v1348_v32  ;;  %v1523_v20 = vunpack.c.h.bf16 %v3651_v49  ;;  %v3678_v59 = vpop.permute.xlu1 %1280 }
 0x136   : > { %v1389_v21 = vadd.f32 %v1381_v2, %v1349_v25  ;;  %v1390_v28 = vadd.f32 %v1382_v52, %v1350_v4  ;;  %v3672_v38 = vrot.slane %v3542_v7, %v3007_v33  ;;  %v3676_v30 = vrot.slane %v3545_v3, %v3007_v33 }
 0x137   : > { %v3682_v12 = vrot.slane %v3549_v48, %v3007_v33  ;;  %v3686_v32 = vrot.slane %v3552_v23, %v3007_v33  ;;  %v3690_v2 = vrot.slane %v3542_v7, %v3022_v39  ;;  %v3694_v52 = vrot.slane %v3545_v3, %v3022_v39 }
 0x138   : > { %v1419_v22 = vmul.f32 %v3672_v38, %v3562_v13  ;;  %v1420_v4 = vmul.f32 %v3676_v30, %v3562_v13  ;;  %v3702_v25 = vrot.slane %v3549_v48, %v3022_v39  ;;  %v3706_v49 = vrot.slane %v3552_v23, %v3022_v39 }
 0x139   : > { %v1421_v29 = vmul.f32 %v3682_v12, %v3562_v13  ;;  %v1422_v0 = vmul.f32 %v3686_v32, %v3562_v13  ;;  %v1459_v14 = vmul.f32 %v3690_v2, %v3306_v26  ;;  %v1460_v33 = vmul.f32 %v3694_v52, %v3306_v26 }
 0x13a   : > { %v1427_v35 = vadd.f32 %v1419_v22, %v1387_v1  ;;  %v1428_v5 = vadd.f32 %v1420_v4, %v1388_v62  ;;  %v1461_v11 = vmul.f32 %v3702_v25, %v3306_v26  ;;  %v1462_v39 = vmul.f32 %v3706_v49, %v3306_v26  ;;  %v1321_v24 = vpop.permute.xlu1 %1320 }
 0x13b   : > { %v1429_v47 = vadd.f32 %v1421_v29, %v1389_v21  ;;  %v1430_v18 = vadd.f32 %v1422_v0, %v1390_v28  ;;  %v3722_v43 = vrot.slane %v3542_v7, %v3010_v34  ;;  %v3726_v13 = vrot.slane %v3545_v3, %v3010_v34 }
 0x13c   : > { %v1467_v54 = vadd.f32 %v1459_v14, %v1427_v35  ;;  %v1468_v1 = vadd.f32 %v1460_v33, %v1428_v5  ;;  %v3730_v62 = vrot.slane %v3549_v48, %v3010_v34  ;;  %v3734_v26 = vrot.slane %v3552_v23, %v3010_v34 }
 0x13d   : > { %v1469_v21 = vadd.f32 %v1461_v11, %v1429_v47  ;;  %v1470_v28 = vadd.f32 %v1462_v39, %v1430_v18  ;;  %v1499_v7 = vmul.f32 %v3722_v43, %v3616_v58  ;;  %v1500_v3 = vmul.f32 %v3726_v13, %v3616_v58 }
 0x13e   : > { %v1383_v22 = vmul.f32 %v1366_v15, %v3326_v61  ;;  %v1384_v33 = vmul.f32 %v1370_v45, %v3326_v61  ;;  %v1501_v35 = vmul.f32 %v3730_v62, %v3616_v58  ;;  %v1502_v5 = vmul.f32 %v3734_v26, %v3616_v58 }
 0x13f   : > { %v1385_v48 = vmul.f32 %v1374_v31, %v3326_v61  ;;  %v1386_v39 = vmul.f32 %v1378_v37, %v3326_v61  ;;  %v1507_v18 = vadd.f32 %v1499_v7, %v1467_v54  ;;  %v1508_v47 = vadd.f32 %v1500_v3, %v1468_v1  ;;  %v1401_v45 = vpop.permute.xlu1 %1400 }
 0x140   : > { %v1509_v11 = vadd.f32 %v1501_v35, %v1469_v21  ;;  %v1510_v23 = vadd.f32 %v1502_v5, %v1470_v28  ;;  %v1231_v14 = vmul.f32 %v3556_v42, %v3653_v53  ;;  %v1232_v15 = vmul.f32 %v3566_v51, %v3653_v53 }
 0x141   : > { %v4209_v4 = vunpack.c.l.bf16 %v3539_v56  ;;  %v1529_v0 = vadd.f32 %v1521_v8, %v1508_v47  ;;  %v1233_v58 = vmul.f32 %v3582_v57, %v3653_v53  ;;  %v1234_v37 = vmul.f32 %v3586_v27, %v3653_v53 }
 0x142   : > { %v1530_v61 = vadd.f32 %v1522_v50, %v1509_v11  ;;  %v1531_v54 = vadd.f32 %v1523_v20, %v1510_v23  ;;  %v1263_v31 = vmul.f32 %v3560_v17, %v3320_v6  ;;  %v1264_v42 = vmul.f32 %v3570_v41, %v3320_v6 }
 0x143   : > { %v1528_v29 = vadd.f32 %v4209_v4, %v1507_v18  ;;  %v2387_v1 = vmul.f32 -1.442695, %v1529_v0  ;;  %v1265_v56 = vmul.f32 %v3592_v63, %v3320_v6  ;;  %v1266_v8 = vmul.f32 %v3598_v55, %v3320_v6 }
 0x144   : > { %v2388_v57 = vmul.f32 -1.442695, %v1530_v61  ;;  %v2389_v21 = vmul.f32 -1.442695, %v1531_v54  ;;  %v1271_v28 = vadd.f32 %v1263_v31, %v1231_v14  ;;  %v1272_v27 = vadd.f32 %v1264_v42, %v1232_v15  ;;  %v1441_v20 = vpop.permute.xlu1 %1440 }
 0x145   : > { %v2386_v51 = vmul.f32 -1.442695, %v1528_v29  ;;  %v1273_v53 = vadd.f32 %v1265_v56, %v1233_v58  ;;  %v1274_v50 = vadd.f32 %v1266_v8, %v1234_v37  ;;  %v1303_v17 = vmul.f32 %v3574_v40, %v3678_v59 }
 0x146   : > { %v1304_v41 = vmul.f32 %v3578_v46, %v3678_v59  ;;  %v1305_v63 = vmul.f32 %v3609_v16, %v3678_v59  ;;  %v1306_v6 = vmul.f32 %v3614_v9, %v3678_v59  ;;  %v1343_v7 = vmul.f32 %v3624_v44, %v1321_v24 }
 0x147   : > { %2592 = vpow2.f32 %v2386_v51  ;;  %v1311_v55 = vadd.f32 %v1303_v17, %v1271_v28  ;;  %v1344_v3 = vmul.f32 %v3628_v10, %v1321_v24  ;;  %v1345_v18 = vmul.f32 %v3632_v60, %v1321_v24  ;;  %v2385_v60 = vld [vmem:[%s3099_s29 + $0x38] sm:$0xff] }
 0x148   : > { %2594 = vpow2.f32 %v2387_v1  ;;  %v1312_v35 = vadd.f32 %v1304_v41, %v1272_v27  ;;  %v1313_v40 = vadd.f32 %v1305_v63, %v1273_v53  ;;  %v1314_v5 = vadd.f32 %v1306_v6, %v1274_v50  ;;  %v3804_v6 = vpop.permute.xlu0 %1687 }
 0x149   : > { %2596 = vpow2.f32 %v2388_v57  ;;  %v1346_v46 = vmul.f32 %v3636_v19, %v1321_v24  ;;  %v1351_v47 = vadd.f32 %v1343_v7, %v1311_v55  ;;  %v1423_v16 = vmul.f32 %v3672_v38, %v1401_v45  ;;  %v3782_v10 = vpop.permute.xlu1 %1575 }
 0x14a   : > { %2598 = vpow2.f32 %v2389_v21  ;;  %v1352_v11 = vadd.f32 %v1344_v3, %v1312_v35  ;;  %v1424_v9 = vmul.f32 %v3676_v30, %v1401_v45  ;;  %v1425_v59 = vmul.f32 %v3682_v12, %v1401_v45 }
 0x14b   : > { %v1426_v44 = vmul.f32 %v3686_v32, %v1401_v45  ;;  %v1353_v23 = vadd.f32 %v1345_v18, %v1313_v40  ;;  %v1354_v14 = vadd.f32 %v1346_v46, %v1314_v5  ;;  %v1391_v15 = vadd.f32 %v1383_v22, %v1351_v47  ;;  %v4210_v45 = vld [vmem:[#allocation26_spill] sm:$0xff]  ;;  %v4212_v40 = vld [vmem:[#allocation21_spill] sm:$0xff] }
 0x14c   : > { %v1463_v4 = vmul.f32 %v3690_v2, %v1441_v20  ;;  %v1392_v29 = vadd.f32 %v1384_v33, %v1352_v11  ;;  %v1464_v24 = vmul.f32 %v3694_v52, %v1441_v20  ;;  %v1465_v38 = vmul.f32 %v3702_v25, %v1441_v20  ;;  %v1027_v3 = vpop.permute.xlu0 %1026  ;;  %v4214_v11 = vld [vmem:[#allocation23_spill] sm:$0xff] }
 0x14d   : > { %v1525_v19 = vunpack.c.h.bf16 %v3660_v36  ;;  %v1393_v30 = vadd.f32 %v1385_v48, %v1353_v23  ;;  %v1394_v0 = vadd.f32 %v1386_v39, %v1354_v14  ;;  %v1431_v12 = vadd.f32 %v1423_v16, %v1391_v15  ;;  %v4216_v14 = vld [vmem:[#allocation37_spill] sm:$0xff] }
 0x14e   : > { %v1466_v32 = vmul.f32 %v3706_v49, %v1441_v20  ;;  %v1503_v58 = vmul.f32 %v3722_v43, %v4210_v45  ;;  %v1432_v37 = vadd.f32 %v1424_v9, %v1392_v29  ;;  %v1526_v22 = vunpack.c.l.bf16 %v2385_v60  ;;  %v3794_v31 = vpop.permute.xlu1 %1607  ;;  %v4218_v29 = vld [vmem:[#allocation28_spill] sm:$0xff] }
 0x14f   : > { %v1527_v61 = vunpack.c.h.bf16 %v2385_v60  ;;  %v1504_v33 = vmul.f32 %v3726_v13, %v4210_v45  ;;  %v1433_v52 = vadd.f32 %v1425_v59, %v1393_v30  ;;  %v1434_v54 = vadd.f32 %v1426_v44, %v1394_v0  ;;  %v4215_v59 = vld [vmem:[#allocation20_spill] sm:$0xff] }
 0x150   : > { %v1471_v25 = vadd.f32 %v1463_v4, %v1431_v12  ;;  %v1505_v39 = vmul.f32 %v3730_v62, %v4210_v45  ;;  %v1506_v49 = vmul.f32 %v3734_v26, %v4210_v45  ;;  %v1472_v42 = vadd.f32 %v1464_v24, %v1432_v37  ;;  %v4217_v4 = vld [vmem:[#allocation38_spill] sm:$0xff]  ;;  %v4221_v45 = vld [vmem:[#allocation32_spill] sm:$0xff] }
 0x151   : > { %v2593_v2 = vpop.eup %2592  ;;  %v1473_v56 = vadd.f32 %v1465_v38, %v1433_v52  ;;  %v1474_v8 = vadd.f32 %v1466_v32, %v1434_v54  ;;  %v4211_v62 = vunpack.c.l.bf16 %v3660_v36  ;;  %v4213_v36 = vld [vmem:[#allocation27_spill] sm:$0xff]  ;;  %v3809_v9 = vmul.f32 %v4214_v11, %v1027_v3  ;;  %v4219_v38 = vld [vmem:[#allocation29_spill] sm:$0xff]  ;;  %v4220_v12 = vld [vmem:[#allocation30_spill] sm:$0xff] }
 0x152   : > { %v2595_v48 = vpop.eup %2594  ;;  %v1548_v43 = vadd.f32 1.0, %v2593_v2  ;;  %v1511_v57 = vadd.f32 %v1503_v58, %v1471_v25  ;;  %v1512_v28 = vadd.f32 %v1504_v33, %v1472_v42  ;;  %v3812_v44 = vmul.f32 %v4215_v59, %v1027_v3  ;;  %v4222_v37 = vld [vmem:[#allocation22_spill] sm:$0xff]  ;;  %v4223_v33 = vld [vmem:[#allocation31_spill] sm:$0xff]  ;;  %v4229_v59 = vld [vmem:[#allocation33_spill] sm:$0xff] }
 0x153   : > { %v2597_v51 = vpop.eup %2596  ;;  %v1549_v1 = vadd.f32 1.0, %v2595_v48  ;;  %v1513_v53 = vadd.f32 %v1505_v39, %v1473_v56  ;;  %v1514_v50 = vadd.f32 %v1506_v49, %v1474_v8  ;;  %v3802_v20 = vpop.permute.xlu1 %1647  ;;  %v3815_v15 = vmul.f32 %v4216_v14, %v1027_v3  ;;  %v4224_v54 = vld [vmem:[#allocation35_spill] sm:$0xff]  ;;  %v4225_v48 = vld [vmem:[#allocation36_spill] sm:$0xff]  ;;  %v4227_v56 = vld [vmem:[#allocation9_spill] sm:$0xff] }
 0x154   : > { %v2599_v13 = vpop.eup %2598  ;;  %v1550_v21 = vadd.f32 1.0, %v2597_v51  ;;  %2600 = vrcp.f32 %v1548_v43  ;;  %v1532_v17 = vadd.f32 %v4211_v62, %v1511_v57  ;;  %v1533_v26 = vadd.f32 %v1525_v19, %v1512_v28  ;;  %v4226_v51 = vld [vmem:[#allocation12_spill] sm:$0xff]  ;;  %v4228_v57 = vld [vmem:[#allocation13_spill] sm:$0xff]  ;;  %v4230_v14 = vld [vmem:[#allocation34_spill] sm:$0xff] }
 0x155   : > { %v1551_v27 = vadd.f32 1.0, %v2599_v13  ;;  %2602 = vrcp.f32 %v1549_v1  ;;  %v1534_v41 = vadd.f32 %v1526_v22, %v1513_v53  ;;  %v1535_v63 = vadd.f32 %v1527_v61, %v1514_v50 }
 0x156   : > { %2604 = vrcp.f32 %v1550_v21  ;;  %v3818_v60 = vmul.f32 %v4217_v4, %v1027_v3 }
 0x157   : > { %2606 = vrcp.f32 %v1551_v27 }
 0x158   : > { %2608 = vtanh.f32 %v1532_v17  ;;  %v947_v55 = vpop.permute.xlu1 %946 }
 0x159   : > { %2610 = vtanh.f32 %v1533_v26  ;;  %v969_v5 = vmul.f32 %v4212_v40, %v947_v55  ;;  %v970_v18 = vmul.f32 %v4213_v36, %v947_v55  ;;  %v971_v24 = vmul.f32 %v4218_v29, %v947_v55 }
 0x15a   : > { %2612 = vtanh.f32 %v1534_v41  ;;  %v972_v19 = vmul.f32 %v4219_v38, %v947_v55 }
 0x15b   : > { %2614 = vtanh.f32 %v1535_v63  ;;  %v977_v32 = vadd.f32 %v969_v5, %v4220_v12  ;;  %v978_v58 = vadd.f32 %v970_v18, %v4221_v45 }
 0x15c   : > { %v980_v4 = vadd.f32 %v972_v19, %v4230_v14 }
 0x15d   : > { %v987_v47 = vpop.permute.xlu1 %986 }
 0x15e   : > { %v2601_v7 = vpop.eup %2600  ;;  %v1009_v22 = vmul.f32 %v4222_v37, %v987_v47  ;;  %v1010_v52 = vmul.f32 %v4223_v33, %v987_v47  ;;  %v1011_v25 = vmul.f32 %v4224_v54, %v987_v47  ;;  %v1012_v39 = vmul.f32 %v4225_v48, %v987_v47  ;;  %v4231_v37 = vld [vmem:[#allocation15_spill] sm:$0xff] }
 0x15f   : > { %v2603_v35 = vpop.eup %2602 }
 0x160   : > { %v2605_v46 = vpop.eup %2604  ;;  %v1017_v29 = vadd.f32 %v1009_v22, %v977_v32  ;;  %v1018_v45 = vadd.f32 %v1010_v52, %v978_v58  ;;  %v1808_v32 = vpop.permute.xlu0 %1807  ;;  %v1020_v22 = vadd.f32 %v1012_v39, %v980_v4 }
 0x161   : > { %v2607_v16 = vpop.eup %2606  ;;  %v3832_v49 = vpop.permute.xlu1 %1727 }
 0x162   : > { %v2609_v23 = vpop.eup %2608 }
 0x163   : > { %v2611_v30 = vpop.eup %2610  ;;  %v3822_v0 = vmul.f32 %v2609_v23, %v2601_v7  ;;  %v979_v23 = vadd.f32 %v971_v24, %v4229_v59 }
 0x164   : > { %v2613_v61 = vpop.eup %2612  ;;  %v3827_v2 = vmul.f32 %v2611_v30, %v2603_v35 }
 0x165   : > { %v2615_v43 = vpop.eup %2614  ;;  %v3834_v42 = vmul.f32 %v2613_v61, %v2605_v46  ;;  %v1581_v1 = vrot.slane %v3822_v0, %v4226_v51  ;;  %v1613_v8 = vrot.slane %v3822_v0, %v4227_v56  ;;  %v1653_v13 = vrot.slane %v3822_v0, %v4228_v57 }
 0x166   : > { %v3842_v21 = vmul.f32 %v2615_v43, %v2607_v16  ;;  %v1585_v28 = vrot.slane %v3827_v2, %v4226_v51  ;;  %v1617_v27 = vrot.slane %v3827_v2, %v4227_v56  ;;  %v1657_v53 = vrot.slane %v3827_v2, %v4228_v57  ;;  %v3866_v36 = vpop.permute.xlu1 %1767 }
 0x167   : > { %v1589_v50 = vrot.slane %v3834_v42, %v4226_v51  ;;  %v1598_v62 = vmul.f32 %v1581_v1, %v3782_v10  ;;  %v1621_v17 = vrot.slane %v3834_v42, %v4227_v56  ;;  %v1630_v26 = vmul.f32 %v1613_v8, %v3794_v31  ;;  %v4232_v1 = vld [vmem:[#allocation10_spill] sm:$0xff] }
 0x168   : > { %v1593_v41 = vrot.slane %v3842_v21, %v4226_v51  ;;  %v1599_v63 = vmul.f32 %v1585_v28, %v3782_v10  ;;  %v1625_v55 = vrot.slane %v3842_v21, %v4227_v56  ;;  %v1631_v7 = vmul.f32 %v1617_v27, %v3794_v31 }
 0x169   : > { %v1600_v3 = vmul.f32 %v1589_v50, %v3782_v10  ;;  %v1632_v35 = vmul.f32 %v1621_v17, %v3794_v31  ;;  %v1638_v40 = vadd.f32 %v1630_v26, %v1598_v62  ;;  %v1661_v5 = vrot.slane %v3834_v42, %v4228_v57 }
 0x16a   : > { %v1601_v18 = vmul.f32 %v1593_v41, %v3782_v10  ;;  %v1633_v46 = vmul.f32 %v1625_v55, %v3794_v31  ;;  %v1639_v47 = vadd.f32 %v1631_v7, %v1599_v63  ;;  %v1665_v16 = vrot.slane %v3842_v21, %v4228_v57 }
 0x16b   : > { %v1640_v11 = vadd.f32 %v1632_v35, %v1600_v3  ;;  %v1670_v30 = vmul.f32 %v1653_v13, %v3802_v20  ;;  %v1671_v12 = vmul.f32 %v1657_v53, %v3802_v20  ;;  %v1672_v10 = vmul.f32 %v1661_v5, %v3802_v20  ;;  %v1067_v48 = vpop.permute.xlu1 %1066  ;;  %v4233_v53 = vld [vmem:[#allocation14_spill] sm:$0xff] }
 0x16c   : > { %v1641_v38 = vadd.f32 %v1633_v46, %v1601_v18  ;;  %v1813_v31 = vrot.slane %v3822_v0, %v4231_v37  ;;  %v1817_v61 = vrot.slane %v3827_v2, %v4231_v37  ;;  %v1019_v33 = vadd.f32 %v1011_v25, %v979_v23  ;;  %v4234_v46 = vld [vmem:[#allocation11_spill] sm:$0xff] }
 0x16d   : > { %v1673_v24 = vmul.f32 %v1665_v16, %v3802_v20  ;;  %v1678_v54 = vadd.f32 %v1670_v30, %v1638_v40  ;;  %v1679_v19 = vadd.f32 %v1671_v12, %v1639_v47  ;;  %v1680_v43 = vadd.f32 %v1672_v10, %v1640_v11 }
 0x16e   : > { %v1693_v58 = vrot.slane %v3822_v0, %v4232_v1  ;;  %v1697_v52 = vrot.slane %v3827_v2, %v4232_v1  ;;  %v1701_v8 = vrot.slane %v3834_v42, %v4232_v1  ;;  %v1821_v25 = vrot.slane %v3834_v42, %v4231_v37 }
 0x16f   : > { %v1681_v13 = vadd.f32 %v1673_v24, %v1641_v38  ;;  %v1825_v20 = vrot.slane %v3842_v21, %v4231_v37  ;;  %v1705_v39 = vrot.slane %v3842_v21, %v4232_v1  ;;  %v3894_v28 = vmul.f32 %v1813_v31, %v1808_v32 }
 0x170   : > { %v3896_v27 = vmul.f32 %v1817_v61, %v1808_v32  ;;  %v1733_v50 = vrot.slane %v3822_v0, %v4233_v53  ;;  %v1737_v62 = vrot.slane %v3827_v2, %v4233_v53  ;;  %v1710_v17 = vmul.f32 %v1693_v58, %v3804_v6  ;;  %v1107_v40 = vpop.permute.xlu1 %1106 }
 0x171   : > { %v1711_v26 = vmul.f32 %v1697_v52, %v3804_v6  ;;  %v1712_v41 = vmul.f32 %v1701_v8, %v3804_v6  ;;  %v1741_v63 = vrot.slane %v3834_v42, %v4233_v53  ;;  %v1713_v55 = vmul.f32 %v1705_v39, %v3804_v6 }
 0x172   : > { %v1745_v7 = vrot.slane %v3842_v21, %v4233_v53  ;;  %v1750_v3 = vmul.f32 %v1733_v50, %v3832_v49  ;;  %v1751_v35 = vmul.f32 %v1737_v62, %v3832_v49  ;;  %v1718_v5 = vadd.f32 %v1710_v17, %v1678_v54 }
 0x173   : > { %v1719_v18 = vadd.f32 %v1711_v26, %v1679_v19  ;;  %v1773_v47 = vrot.slane %v3822_v0, %v4234_v46  ;;  %v1777_v16 = vrot.slane %v3827_v2, %v4234_v46  ;;  %v1720_v11 = vadd.f32 %v1712_v41, %v1680_v43  ;;  %v4239_v41 = vld [vmem:[#allocation25_spill] sm:$0xff] }
 0x174   : > { %v1721_v59 = vadd.f32 %v1713_v55, %v1681_v13  ;;  %v1752_v6 = vmul.f32 %v1741_v63, %v3832_v49  ;;  %v1781_v23 = vrot.slane %v3834_v42, %v4234_v46  ;;  %v1753_v14 = vmul.f32 %v1745_v7, %v3832_v49  ;;  %v1848_v24 = vpop.permute.xlu1 %1847  ;;  %v4235_v13 = vld [vmem:[#allocation24_spill] sm:$0xff]  ;;  %v4240_v55 = vld [vmem:[#allocation42_spill] sm:$0xff]  ;;  %v4241_v7 = vld [vmem:[#allocation43_spill] sm:$0xff] }
 0x175   : > { %v1785_v4 = vrot.slane %v3842_v21, %v4234_v46  ;;  %v1790_v38 = vmul.f32 %v1773_v47, %v3866_v36  ;;  %v1791_v30 = vmul.f32 %v1777_v16, %v3866_v36  ;;  %v1057_v10 = vadd.f32 %v3809_v9, %v1017_v29  ;;  %v4236_v9 = vld [vmem:[#allocation39_spill] sm:$0xff] }
 0x176   : > { %v1792_v12 = vmul.f32 %v1781_v23, %v3866_v36  ;;  %v1058_v31 = vadd.f32 %v3812_v44, %v1018_v45  ;;  %v1059_v61 = vadd.f32 %v3815_v15, %v1019_v33  ;;  %v1758_v54 = vadd.f32 %v1750_v3, %v1718_v5  ;;  %v4237_v45 = vld [vmem:[#allocation40_spill] sm:$0xff]  ;;  %v4238_v33 = vld [vmem:[#allocation41_spill] sm:$0xff] }
 0x177   : > { %v1759_v19 = vadd.f32 %v1751_v35, %v1719_v18  ;;  %v1793_v49 = vmul.f32 %v1785_v4, %v3866_v36  ;;  %v1060_v43 = vadd.f32 %v3818_v60, %v1020_v22  ;;  %v1832_v58 = vmul.f32 %v1821_v25, %v1808_v32  ;;  %v4242_v35 = vld [vmem:[#allocation44_spill] sm:$0xff] }
 0x178   : > { %v1833_v52 = vmul.f32 %v1825_v20, %v1808_v32  ;;  %v1760_v8 = vadd.f32 %v1752_v6, %v1720_v11  ;;  %v1089_v39 = vmul.f32 %v4235_v13, %v1067_v48  ;;  %v1761_v50 = vadd.f32 %v1753_v14, %v1721_v59 }
 0x179   : > { %v1798_v62 = vadd.f32 %v1790_v38, %v1758_v54  ;;  %v1799_v17 = vadd.f32 %v1791_v30, %v1759_v19  ;;  %v1090_v29 = vmul.f32 %v4236_v9, %v1067_v48  ;;  %v1091_v15 = vmul.f32 %v4237_v45, %v1067_v48  ;;  %v1888_v25 = vpop.permute.xlu1 %1887 }
 0x17a   : > { %v1800_v44 = vadd.f32 %v1792_v12, %v1760_v8  ;;  %v1092_v26 = vmul.f32 %v4238_v33, %v1067_v48  ;;  %v1129_v63 = vmul.f32 %v4239_v41, %v1107_v40  ;;  %v1801_v36 = vadd.f32 %v1793_v49, %v1761_v50 }
 0x17b   : > { %v1130_v60 = vmul.f32 %v4240_v55, %v1107_v40  ;;  %v1853_v32 = vrot.slane %v3822_v0, %v3010_v34  ;;  %v1857_v22 = vrot.slane %v3827_v2, %v3010_v34  ;;  %v1097_v20 = vadd.f32 %v1089_v39, %v1057_v10 }
 0x17c   : > { %v1131_v3 = vmul.f32 %v4241_v7, %v1107_v40  ;;  %v1132_v5 = vmul.f32 %v4242_v35, %v1107_v40  ;;  %v1861_v48 = vrot.slane %v3834_v42, %v3010_v34  ;;  %v1098_v18 = vadd.f32 %v1090_v29, %v1058_v31  ;;  %v1147_v40 = vpop.permute.xlu0 %1146 }
 0x17d   : > { %v1865_v47 = vrot.slane %v3842_v21, %v3010_v34  ;;  %v1870_v16 = vmul.f32 %v1853_v32, %v1848_v24  ;;  %v1871_v11 = vmul.f32 %v1857_v22, %v1848_v24  ;;  %v1099_v59 = vadd.f32 %v1091_v15, %v1059_v61 }
 0x17e   : > { %v1100_v0 = vadd.f32 %v1092_v26, %v1060_v43  ;;  %v1137_v6 = vadd.f32 %v1129_v63, %v1097_v20  ;;  %v1872_v23 = vmul.f32 %v1861_v48, %v1848_v24  ;;  %v1138_v2 = vadd.f32 %v1130_v60, %v1098_v18  ;;  %v1932_v31 = vpop.permute.xlu1 %1931 }
 0x17f   : > { %v1873_v14 = vmul.f32 %v1865_v47, %v1848_v24  ;;  %v1838_v4 = vadd.f32 %v3894_v28, %v1798_v62  ;;  %v1839_v38 = vadd.f32 %v3896_v27, %v1799_v17  ;;  %v1139_v30 = vadd.f32 %v1131_v3, %v1099_v59 }
 0x180   : > { %v1140_v12 = vadd.f32 %v1132_v5, %v1100_v0  ;;  %v1840_v42 = vadd.f32 %v1832_v58, %v1800_v44  ;;  %v1841_v10 = vadd.f32 %v1833_v52, %v1801_v36  ;;  %v1153_v61 = vadd.f32 %v1147_v40, %v1137_v6  ;;  %v1956_v58 = vpop.permute.xlu0 %1955 }
 0x181   : > { %v1878_v54 = vadd.f32 %v1870_v16, %v1838_v4  ;;  %v1879_v21 = vadd.f32 %v1871_v11, %v1839_v38  ;;  %v1154_v43 = vadd.f32 %v1147_v40, %v1138_v2  ;;  %v1155_v39 = vadd.f32 %v1147_v40, %v1139_v30 }
 0x182   : > { %v1880_v19 = vadd.f32 %v1872_v23, %v1840_v42  ;;  %v1881_v49 = vadd.f32 %v1873_v14, %v1841_v10  ;;  %v1156_v24 = vadd.f32 %v1147_v40, %v1140_v12 }
 0x183   : > { %v1894_v8 = vadd.f32 %v1888_v25, %v1878_v54  ;;  %v1895_v13 = vadd.f32 %v1888_v25, %v1879_v21  ;;  %v1984_v29 = vpop.permute.xlu1 %1983 }
 0x184   : > { %v1896_v50 = vadd.f32 %v1888_v25, %v1880_v19  ;;  %v1897_v28 = vadd.f32 %v1888_v25, %v1881_v49  ;;  %v2040_v35 = vpop.permute.xlu0 %2039 }
 0x185   : > { %v1914_v62 = vadd.f32 %v1894_v8, %v1153_v61  ;;  %v1915_v27 = vadd.f32 %v1895_v13, %v1154_v43 }
 0x186   : > { %v1916_v17 = vadd.f32 %v1896_v50, %v1155_v39  ;;  %v1917_v9 = vadd.f32 %v1897_v28, %v1156_v24 }
 0x187   : > { %v3948_v52 = vmul.f32 0.70710677, %v1914_v62  ;;  %v3950_v44 = vmul.f32 0.70710677, %v1915_v27 }
 0x188   : > { %v3952_v45 = vmul.f32 0.70710677, %v1916_v17  ;;  %v3954_v15 = vmul.f32 0.70710677, %v1917_v9  ;;  %v2012_v3 = vpop.permute.xlu1 %2011 }
 0x189   : > { %v2045_v33 = vrot.slane %v3948_v52, %v4233_v53  ;;  %v2049_v26 = vrot.slane %v3950_v44, %v4233_v53  ;;  %v1937_v41 = vrot.slane %v3948_v52, %v4226_v51  ;;  %v1941_v63 = vrot.slane %v3950_v44, %v4226_v51 }
 0x18a   : > { %v2053_v36 = vrot.slane %v3952_v45, %v4233_v53  ;;  %v2057_v55 = vrot.slane %v3954_v15, %v4233_v53  ;;  %v1945_v60 = vrot.slane %v3952_v45, %v4226_v51  ;;  %v1949_v32 = vrot.slane %v3954_v15, %v4226_v51 }
 0x18b   : > { %v1950_v22 = vmul.f32 %v1937_v41, %v1932_v31  ;;  %v1951_v25 = vmul.f32 %v1941_v63, %v1932_v31  ;;  %v1961_v5 = vrot.slane %v3948_v52, %v4227_v56  ;;  %v1965_v48 = vrot.slane %v3950_v44, %v4227_v56 }
 0x18c   : > { %v1952_v20 = vmul.f32 %v1945_v60, %v1932_v31  ;;  %v1953_v7 = vmul.f32 %v1949_v32, %v1932_v31  ;;  %v1969_v53 = vrot.slane %v3952_v45, %v4227_v56  ;;  %v1973_v18 = vrot.slane %v3954_v15, %v4227_v56 }
 0x18d   : > { %v2058_v47 = vmul.f32 %v2045_v33, %v2040_v35  ;;  %v2059_v51 = vmul.f32 %v2049_v26, %v2040_v35  ;;  %v2060_v16 = vmul.f32 %v2053_v36, %v2040_v35  ;;  %v2061_v11 = vmul.f32 %v2057_v55, %v2040_v35  ;;  %v2068_v21 = vpop.permute.xlu1 %2067 }
 0x18e   : > { %v1974_v59 = vmul.f32 %v1961_v5, %v1956_v58  ;;  %v1975_v0 = vmul.f32 %v1965_v48, %v1956_v58  ;;  %v1976_v6 = vmul.f32 %v1969_v53, %v1956_v58  ;;  %v1977_v23 = vmul.f32 %v1973_v18, %v1956_v58  ;;  %v2124_v5 = vpop.permute.xlu0 %2123 }
 0x18f   : > { %v2129_v2 = vrot.slane %v3948_v52, %v3010_v34  ;;  %v2133_v14 = vrot.slane %v3950_v44, %v3010_v34  ;;  %v2137_v4 = vrot.slane %v3952_v45, %v3010_v34  ;;  %v2141_v56 = vrot.slane %v3954_v15, %v3010_v34 }
 0x190   : > { %v1978_v38 = vadd.f32 %v1974_v59, %v1950_v22  ;;  %v1979_v40 = vadd.f32 %v1975_v0, %v1951_v25  ;;  %v1980_v30 = vadd.f32 %v1976_v6, %v1952_v20  ;;  %v1981_v12 = vadd.f32 %v1977_v23, %v1953_v7 }
 0x191   : > { %v1989_v42 = vrot.slane %v3948_v52, %v4228_v57  ;;  %v1993_v10 = vrot.slane %v3950_v44, %v4228_v57  ;;  %v1997_v31 = vrot.slane %v3952_v45, %v4228_v57  ;;  %v2001_v54 = vrot.slane %v3954_v15, %v4228_v57 }
 0x192   : > { %v2017_v34 = vrot.slane %v3948_v52, %v4232_v1  ;;  %v2021_v19 = vrot.slane %v3950_v44, %v4232_v1  ;;  %v2025_v49 = vrot.slane %v3952_v45, %v4232_v1  ;;  %v2029_v61 = vrot.slane %v3954_v15, %v4232_v1 }
 0x193   : > { %v2002_v43 = vmul.f32 %v1989_v42, %v1984_v29  ;;  %v2003_v8 = vmul.f32 %v1993_v10, %v1984_v29  ;;  %v2004_v13 = vmul.f32 %v1997_v31, %v1984_v29  ;;  %v2005_v39 = vmul.f32 %v2001_v54, %v1984_v29  ;;  %v2096_v55 = vpop.permute.xlu1 %2095 }
 0x194   : > { %v2030_v24 = vmul.f32 %v2017_v34, %v2012_v3  ;;  %v2031_v50 = vmul.f32 %v2021_v19, %v2012_v3  ;;  %v2032_v57 = vmul.f32 %v2025_v49, %v2012_v3  ;;  %v2033_v28 = vmul.f32 %v2029_v61, %v2012_v3 }
 0x195   : > { %v2006_v62 = vadd.f32 %v2002_v43, %v1978_v38  ;;  %v2007_v27 = vadd.f32 %v2003_v8, %v1979_v40  ;;  %v2008_v17 = vadd.f32 %v2004_v13, %v1980_v30  ;;  %v2009_v9 = vadd.f32 %v2005_v39, %v1981_v12 }
 0x196   : > { %v2073_v58 = vrot.slane %v3948_v52, %v4234_v46  ;;  %v2077_v33 = vrot.slane %v3950_v44, %v4234_v46  ;;  %v2081_v1 = vrot.slane %v3952_v45, %v4234_v46  ;;  %v2085_v29 = vrot.slane %v3954_v15, %v4234_v46 }
 0x197   : > { %v2034_v26 = vadd.f32 %v2030_v24, %v2006_v62  ;;  %v2035_v41 = vadd.f32 %v2031_v50, %v2007_v27  ;;  %v2036_v63 = vadd.f32 %v2032_v57, %v2008_v17  ;;  %v2037_v36 = vadd.f32 %v2033_v28, %v2009_v9 }
 0x198   : > { %v2086_v60 = vmul.f32 %v2073_v58, %v2068_v21  ;;  %v2087_v32 = vmul.f32 %v2077_v33, %v2068_v21  ;;  %v2088_v22 = vmul.f32 %v2081_v1, %v2068_v21  ;;  %v2089_v25 = vmul.f32 %v2085_v29, %v2068_v21 }
 0x199   : > { %v2062_v20 = vadd.f32 %v2058_v47, %v2034_v26  ;;  %v2063_v7 = vadd.f32 %v2059_v51, %v2035_v41  ;;  %v2064_v3 = vadd.f32 %v2060_v16, %v2036_v63  ;;  %v2065_v35 = vadd.f32 %v2061_v11, %v2037_v36 }
 0x19a   : > { %v2101_v48 = vrot.slane %v3948_v52, %v4231_v37  ;;  %v2105_v46 = vrot.slane %v3950_v44, %v4231_v37  ;;  %v2109_v53 = vrot.slane %v3952_v45, %v4231_v37  ;;  %v2113_v18 = vrot.slane %v3954_v15, %v4231_v37  ;;  %v2152_v12 = vpop.permute.xlu1 %2151 }
 0x19b   : > { %v2090_v59 = vadd.f32 %v2086_v60, %v2062_v20  ;;  %v2091_v0 = vadd.f32 %v2087_v32, %v2063_v7  ;;  %v2092_v6 = vadd.f32 %v2088_v22, %v2064_v3  ;;  %v2093_v47 = vadd.f32 %v2089_v25, %v2065_v35  ;;  %v2196_v3 = vpop.permute.xlu0 %2195 }
 0x19c   : > { %v2114_v51 = vmul.f32 %v2101_v48, %v2096_v55  ;;  %v2115_v16 = vmul.f32 %v2105_v46, %v2096_v55  ;;  %v2116_v11 = vmul.f32 %v2109_v53, %v2096_v55  ;;  %v2117_v23 = vmul.f32 %v2113_v18, %v2096_v55  ;;  %v4243_v53 = vld [vmem:[#allocation8_spill] sm:$0xff] }
 0x19d   : > { %v2142_v38 = vmul.f32 %v2129_v2, %v2124_v5  ;;  %v2143_v40 = vmul.f32 %v2133_v14, %v2124_v5  ;;  %v2144_v52 = vmul.f32 %v2137_v4, %v2124_v5  ;;  %v2145_v30 = vmul.f32 %v2141_v56, %v2124_v5 }
 0x19e   : > { %v2118_v44 = vadd.f32 %v2114_v51, %v2090_v59  ;;  %v2119_v42 = vadd.f32 %v2115_v16, %v2091_v0  ;;  %v2120_v10 = vadd.f32 %v2116_v11, %v2092_v6  ;;  %v2121_v45 = vadd.f32 %v2117_v23, %v2093_v47 }
 0x19f   : > { %v2164_v61 = vpop.permute.xlu1 %2163  ;;  %v2743_v58 = vmov 1966171168  }
 0x1a0   : > { %v2146_v31 = vadd.f32 %v2142_v38, %v2118_v44  ;;  %v2147_v54 = vadd.f32 %v2143_v40, %v2119_v42  ;;  %v2148_v37 = vadd.f32 %v2144_v52, %v2120_v10  ;;  %v2149_v15 = vadd.f32 %v2145_v30, %v2121_v45 }
 0x1a1   : > { %v2209_v33 = vunpack.c.l.s4 %v2743_v58  ;;  %v4244_v40 = vlaneseq }
 0x1a2   : > { %v2154_v21 = vadd.f32 %v2152_v12, %v2146_v31  ;;  %v2155_v34 = vadd.f32 %v2152_v12, %v2147_v54  ;;  %v2156_v19 = vadd.f32 %v2152_v12, %v2148_v37  ;;  %v2157_v49 = vadd.f32 %v2152_v12, %v2149_v15 }
 0x1a3   : > { %v2210_v32 = vunpack.c.0.s8 %v2209_v33  ;;  %vm2233_vm0 = vcmp.lt.s32.totalorder %v4244_v40, 512 }
 0x1a4   : > { %v2158_v43 = vmax.f32 %v2154_v21, 0.0  ;;  %v2159_v8 = vmax.f32 %v2155_v34, 0.0  ;;  %v2160_v2 = vmax.f32 %v2156_v19, 0.0  ;;  %v2161_v14 = vmax.f32 %v2157_v49, 0.0 }
 0x1a5   : > { %v2213_v18 = vsub.s32 %v2210_v32, %v4243_v53 }
 0x1a6   : > { %v2166_v4 = vmul.f32 %v2164_v61, %v2158_v43  ;;  %v2167_v56 = vmul.f32 %v2164_v61, %v2159_v8  ;;  %v2168_v13 = vmul.f32 %v2164_v61, %v2160_v2  ;;  %v2169_v39 = vmul.f32 %v2164_v61, %v2161_v14 }
 0x1a8   : > { %v2170_v24 = vrot.slane %v2166_v4, 4  ;;  %v2176_v50 = vrot.slane %v2167_v56, 4  ;;  %v2182_v57 = vrot.slane %v2168_v13, 4  ;;  %v2188_v28 = vrot.slane %v2169_v39, 4 }
 0x1aa   : > { %v2171_v62 = vadd.f32 %v2170_v24, %v2166_v4  ;;  %v2177_v27 = vadd.f32 %v2176_v50, %v2167_v56  ;;  %v2183_v17 = vadd.f32 %v2182_v57, %v2168_v13  ;;  %v2189_v9 = vadd.f32 %v2188_v28, %v2169_v39 }
 0x1ac   : > { %v2172_v1 = vrot.slane %v2171_v62, 2  ;;  %v2178_v29 = vrot.slane %v2177_v27, 2  ;;  %v2184_v26 = vrot.slane %v2183_v17, 2  ;;  %v2190_v41 = vrot.slane %v2189_v9, 2 }
 0x1ae   : > { %v2173_v63 = vadd.f32 %v2172_v1, %v2171_v62  ;;  %v2179_v36 = vadd.f32 %v2178_v29, %v2177_v27  ;;  %v2185_v55 = vadd.f32 %v2184_v26, %v2183_v17  ;;  %v2191_v60 = vadd.f32 %v2190_v41, %v2189_v9 }
 0x1b0   : > { %v2174_v22 = vrot.slane %v2173_v63, 1  ;;  %v2180_v25 = vrot.slane %v2179_v36, 1  ;;  %v2186_v20 = vrot.slane %v2185_v55, 1  ;;  %v2192_v7 = vrot.slane %v2191_v60, 1 }
 0x1b2   : > { %v2175_v35 = vadd.f32 %v2174_v22, %v2173_v63  ;;  %v2181_v5 = vadd.f32 %v2180_v25, %v2179_v36  ;;  %v2187_v48 = vadd.f32 %v2186_v20, %v2185_v55  ;;  %v2193_v46 = vadd.f32 %v2192_v7, %v2191_v60 }
 0x1b4   : > { %v2198_v59 = vadd.f32 %v2196_v3, %v2175_v35  ;;  %v2199_v0 = vadd.f32 %v2196_v3, %v2181_v5  ;;  %v2200_v6 = vadd.f32 %v2196_v3, %v2187_v48  ;;  %v2201_v47 = vadd.f32 %v2196_v3, %v2193_v46 }
 0x1b6   : > { %v2206_v51 = vcombine.low %v2198_v59, %v2199_v0  ;;  %v2207_v16 = vcombine.low %v2200_v6, %v2201_v47 }
 0x1b8   : > { %v2214_v11 = vrot.slane %v2206_v51, %v2213_v18  ;;  %v2221_v23 = vrot.slane %v2207_v16, %v2213_v18 }
 0x1ba   : > { %v2222_v38 = vcombine.low %v2214_v11, %v2221_v23 }
 0x1bc   : > { %v2229_v52 = vrot.slane %v2222_v38, %v2213_v18 }
 0x1be   : > { %2235 = vst.msk [vmem:[%s309_s28] sm:$0xf] %vm2233_vm0, %v2229_v52 }
 0x1bf   : > { %2630 = shalt.err (!%p2627_p13)
}
 0x1c0   : > { %s2631_s7 = scalar_lea.hbm %s4028_s23, 64  ;;  %s2635_s29 = scalar_lea.hbm %s4092_s5, 256 }
 0x1c1   : > { %p2632_p0 = scmp.ne.s32.totalorder %s4028_s23, %s2631_s7  ;;  %p2636_p3 = scmp.lt.u32.totalorder %s4028_s23, %s4092_s5 }
 0x1c2   : > { %p2637_p4 = scmp.lt.u32.totalorder %s2635_s29, %s2631_s7  ;;  %p2639_p6 = scmp.lt.u32.totalorder %s2631_s7, %s4028_s23 }
 0x1c3   : > { %p2633_p1 = pnand %p2632_p0, %p2847_p7 }
 0x1c4   : > { %p2638_p5 = por %p2637_p4, %p2636_p3 }
 0x1c5   : > { %p2634_p2 = pneg %p2633_p1 }
 0x1c6   : > { %p2640_p8 = por %p2639_p6, %p2638_p5 }
 0x1c8   : > { %p2641_p9 = pnand %p2640_p8, %p2634_p2 }
 0x1ca   : > { %2644 = shalt.err (!%p2641_p9)
}
 0x1cb   : > { %2398 = dma.vmem_to_hbm [thread:$0]  (%p2847_p7), %s4030_s21, 64, %s4028_s23, %s2237_s13  }
 0x1cc PF: > { %p2404_p10 = scmp.ge.s32.totalorder %s2727_s27, 2  ;;  %s2265_s12 = sand.u32 1, %s2691_s18  }
 0x1cd   : > { %s2266_s8 = scalar_lea.sflag [#allocation6], %s2265_s12 }
 0x1ce   : > { %p2401_p11 = pnand %p2404_p10, %p2855_p12 }
 0x1d0   : > { %2686 = dma.done.wait (!%p2401_p11), %s2266_s8, 64  }
 0x1d1   : > { %2688 = vsyncadd (!%p2401_p11), %s2266_s8, 4294967232  ;;  %s18_s27 = sadd.s32 1, %s2727_s27   ;;  %s4245_s18 = smov %s2695_s19 }
 0x1d2   : > { %p15_p13 = scmp.ge.s32.totalorder %s18_s27, 6   ;;  %s4246_s19 = smov %s2699_s20 }
 0x1d3   : > { %s4247_s20 = smov %s2863_s16  ;;  %s4248_s21 = smov %s2707_s22 }
 0x1d4   : > { %s4249_s22 = smov %s2860_s15  ;;  %s4250_s23 = smov %s2719_s25 }
 0x1d5   : > { %s4251_s24 = smov %s2723_s26  ;;  %s4252_s25 = smov %s4255_s30 }
 0x1d6   : > { %s4253_s26 = smov %s4259_s6  ;;  %17 = sbr.rel (!%p15_p13) target bundleno = 6 (0x6), region = 112 }
 0x1dd   :  { %2271 = vsyncpa [#allocation6], 1 }
 0x1de   :  { %2273 = vsyncpa [#allocation6 + $0x1], 1 }

</bundles_post_ra>
